<compile_context>
chip_gen: v7x
topology: tpu7x:2x2x1
jax: 0.10.0
libtpu: 0.0.40
codegen_flags: <defaults>
</compile_context>

<pallas_src>
import functools

import jax
import jax.numpy as jnp
from jax.experimental import pallas as pl
from jax.experimental.pallas import tpu as pltpu


def _round_up(x, m):
    return -(-x // m) * m


def _transition_kernel(x_ref, xh_ref, w1_ref, b1_ref, w2_ref, b2_ref,
                       w3_ref, b3_ref, out_ref, sph_ref, *, Wo, C2, FRONT):
    """One (image, row-tile) step.

    Block shapes (TW = row_tile * Wo):
      x_ref   : (1, 4, TW, C1)   phase-decomposed input rows of this tile (bf16)
      xh_ref  : (1, 2, Wo, C1)   odd-row phases (2,3) at phase-row r*TH-1 (halo)
      w*_ref  : BN-scale-folded conv weights (bf16); b*_ref biases (f32)
      out_ref : (1, TW, 2*C2)    [cv3 | cv1] concatenated output (bf16)
      sph_ref : (3, FRONT+TW, C2) cv2 activations of phases 1,2,3 (bf16);
                rows [0, FRONT) are an always-initialised halo/pad slot so the
                shifted 3x3 taps never read uninitialised VMEM.
    """
    f32 = jnp.float32
    cdt = sph_ref.dtype
    TW = x_ref.shape[2]

    def silu(z):
        return z * jax.nn.sigmoid(z)

    def cv2(x):  # 1x1 conv (BN folded) -> bias -> SiLU; bf16 elementwise tail
        z = jnp.dot(x, w2_ref[...], preferred_element_type=f32) + b2_ref[...]
        return silu(z.astype(cdt))

    # ---- branch 1: MaxPool2d(2,2) -> 1x1 conv -> SiLU -> right half of output
    xs = [x_ref[0, p] for p in range(4)]                       # (TW, C1) each
    pooled = jnp.maximum(jnp.maximum(xs[0], xs[1]), jnp.maximum(xs[2], xs[3]))
    z1 = jnp.dot(pooled, w1_ref[...], preferred_element_type=f32) + b1_ref[...]
    out_ref[0, :, C2:2 * C2] = silu(z1).astype(out_ref.dtype)

    # ---- branch 2a: cv2 on all 4 phases (+ one-phase-row halo for phases 2,3)
    # Zero the pad/halo slot first (cheap), then overwrite with the real halo
    # when this is not the top row tile -> every tap read is initialised data.
    sph_ref[:, 0:FRONT, :] = jnp.zeros((3, FRONT, C2), cdt)
    on = pl.program_id(1) > 0                                  # r == 0 -> image top border
    t = []
    for p in range(4):
        tp = cv2(xs[p])
        t.append(tp)
        if p > 0:                                              # phase 0 is only used unshifted
            sph_ref[p - 1, pl.ds(FRONT, TW), :] = tp           # aligned (FRONT % 16 == 0)
    for j, plane in ((0, 1), (1, 2)):                          # halo rows of phases 2, 3
        hz = cv2(xh_ref[0, j])
        sph_ref[plane, pl.ds(FRONT - Wo, Wo), :] = jnp.where(on, hz, jnp.zeros_like(hz))

    # ---- branch 2b: cv3 = 3x3 stride-2 pad-1 conv as 9 direct MXU dots.
    # Output (ho,wo), tap (ky,kx) reads full-res pixel (2ho+ky-1, 2wo+kx-1):
    #   ky/kx = 0 -> odd phase, shift -1 ; 1 -> even phase ; 2 -> odd phase.
    # Row shift -1 is realised by reading the scratch Wo rows early (the halo
    # slot supplies row -1); column shift -1 by reading 1 row early + masking
    # the wo == 0 positions (conv left padding).
    q = jax.lax.broadcasted_iota(jnp.int32, (TW, 1), 0)
    col_ok = (q % Wo) != 0                                     # wo >= 1

    def tap(plane, off):                                       # shifted cv2 slab
        return sph_ref[plane, pl.ds(off, TW), :]

    def lmask(a):                                              # zero the wo == 0 rows
        return jnp.where(col_ok, a, jnp.zeros_like(a))

    def mm(a, k, acc=None):                                    # tap k = ky*3 + kx
        d = jnp.dot(a, w3_ref[k * C2:(k + 1) * C2, :], preferred_element_type=f32)
        return d if acc is None else acc + d

    # scratch plane = phase - 1  (phase 0 never needs a shifted read)
    acc = mm(t[0], 4)                                  # (ky=1, kx=1) phase 0
    acc = mm(t[1], 5, acc)                             # (1, 2)       phase 1
    acc = mm(lmask(tap(0, FRONT - 1)), 3, acc)         # (1, 0)       phase 1, col-1
    acc = mm(t[2], 7, acc)                             # (2, 1)       phase 2
    acc = mm(t[3], 8, acc)                             # (2, 2)       phase 3
    acc = mm(lmask(tap(2, FRONT - 1)), 6, acc)         # (2, 0)       phase 3, col-1
    acc = mm(tap(1, FRONT - Wo), 1, acc)               # (0, 1)       phase 2, row-1
    acc = mm(tap(2, FRONT - Wo), 2, acc)               # (0, 2)       phase 3, row-1
    acc = mm(lmask(tap(2, FRONT - Wo - 1)), 0, acc)    # (0, 0)       phase 3, row-1, col-1

    z2 = acc + b3_ref[...]
    out_ref[0, :, 0:C2] = silu(z2).astype(out_ref.dtype)      # torch.cat([x_2, x_1], 1)


def _pick_row_tile(Ho, Wo, C1, C2, budget_bytes=24 << 20):
    # rough per-phase-row VMEM footprint (double-buffered I/O + scratch + temps)
    per_row = (2 * 4 * Wo * C1 * 2      # input block (x2 pipeline buffers), bf16
               + 2 * Wo * 2 * C2 * 2    # output block (x2), bf16
               + 3 * Wo * C2 * 2        # cv2 phase scratch, bf16
               + 24 * Wo * C2)          # value temporaries (t slabs, f32 acc, ...)
    target = max(1, budget_bytes // max(per_row, 1))
    th = 1
    for d in range(1, Ho + 1):
        if Ho % d == 0 and d <= target:
            th = d
    return th


def transition_forward(x_nchw, params, *, row_tile=None, compute_dtype=jnp.bfloat16):
    N, C1, H, W = x_nchw.shape
    C2 = params["b1"].shape[-1]
    assert H % 2 == 0 and W % 2 == 0, "Transition expects even spatial dims"
    Ho, Wo = H // 2, W // 2
    assert Wo % 8 == 0, "row-tiled kernel needs the pooled width to be a multiple of 8"
    if row_tile is None:
        row_tile = _pick_row_tile(Ho, Wo, C1, C2)
    TH = int(row_tile)
    assert 1 <= TH <= Ho and Ho % TH == 0, "row_tile must divide Ho"
    R = Ho // TH
    TW = TH * Wo
    FRONT = _round_up(Wo + 1, 16)    # halo/pad slot; keeps the scratch main region
                                     # aligned to the bf16 (16, 128) tile

    # Phase decomposition xph[n, p, h*Wo+w, c] = x[n, c, 2h + p//2, 2w + p%2].
    # Cast to bf16 BEFORE the layout transpose (halves the HBM glue traffic);
    # a phase/NHWC-resident pipeline would skip this transpose entirely.
    xph = (x_nchw.astype(compute_dtype)
                 .reshape(N, C1, Ho, 2, Wo, 2)
                 .transpose(0, 3, 5, 2, 4, 1)
                 .reshape(N, 4, Ho * Wo, C1))

    kernel = functools.partial(_transition_kernel, Wo=Wo, C2=C2, FRONT=FRONT)

    bf16_b, f32_b = 2, 4
    vmem_est = (2 * (4 * TW + 2 * Wo) * C1 * bf16_b                         # x main + halo blocks (x2 buffers)
                + 2 * TW * 2 * C2 * bf16_b                                  # output block (x2 buffers)
                + 2 * ((2 * C1 + 9 * C2) * C2 * bf16_b + 3 * C2 * f32_b)    # weights / biases
                + 3 * (FRONT + TW) * C2 * bf16_b                            # cv2 phase scratch
                + 24 * TW * C2)                                             # value temporaries (rough)
    vmem_limit = int(min(max(vmem_est * 3 // 2, 16 << 20), 56 << 20))

    out = pl.pallas_call(
        kernel,
        out_shape=jax.ShapeDtypeStruct((N, Ho * Wo, 2 * C2), compute_dtype),
        grid=(N, R),
        in_specs=[
            # main tile: all 4 phases, TH phase-rows
            pl.BlockSpec((1, 4, TW, C1), lambda n, r: (n, 0, r, 0)),
            # halo: odd-row phases (2,3), one phase-row above the tile (clamped at the top)
            pl.BlockSpec((1, 2, Wo, C1),
                         lambda n, r: (n, 1, jnp.maximum(r * TH - 1, 0), 0)),
            pl.BlockSpec((C1, C2), lambda n, r: (0, 0)),       # w1 (BN scale folded, bf16)
            pl.BlockSpec((1, C2), lambda n, r: (0, 0)),        # b1 (f32)
            pl.BlockSpec((C1, C2), lambda n, r: (0, 0)),       # w2
            pl.BlockSpec((1, C2), lambda n, r: (0, 0)),        # b2
            pl.BlockSpec((9 * C2, C2), lambda n, r: (0, 0)),   # w3 fused-K (BN scale folded)
            pl.BlockSpec((1, C2), lambda n, r: (0, 0)),        # b3
        ],
        out_specs=pl.BlockSpec((1, TW, 2 * C2), lambda n, r: (n, r, 0)),
        scratch_shapes=[pltpu.VMEM((3, FRONT + TW, C2), compute_dtype)],
        compiler_params=pltpu.CompilerParams(
            dimension_semantics=("parallel", "parallel"),      # independent tiles (megacore safe)
            vmem_limit_bytes=vmem_limit),
    )(xph, xph, params["w1"], params["b1"], params["w2"], params["b2"],
      params["w3"], params["b3"])

    # back to the PyTorch NCHW interface (bf16); a phase/NHWC-resident pipeline
    # would keep `out` as-is and skip this transpose.
    return out.reshape(N, Ho, Wo, 2 * C2).transpose(0, 3, 1, 2)


# ------------------------- parameter construction -------------------------

def make_params(c1, c2, key, *, compute_dtype=jnp.bfloat16):
    eps = 1e-3
    k1, k2, k3 = jax.random.split(key, 3)
    w1_oihw = 0.2 * jax.random.normal(k1, (c2, c1, 1, 1), jnp.float32)
    w2_oihw = 0.2 * jax.random.normal(k2, (c2, c1, 1, 1), jnp.float32)
    w3_oihw = 0.2 * jax.random.normal(k3, (c2, c2, 3, 3), jnp.float32)

    def bn(c, shift):
        i = jnp.arange(c, dtype=jnp.float32)
        gamma = 1.0 + 0.03 * i + shift
        beta = 0.02 * i - shift
        mean = 0.05 * i + 0.1 * shift
        var = 1.0 + 0.1 * i
        scale = gamma / jnp.sqrt(var + eps)
        bias = beta - mean * scale
        return scale, bias

    s1, b1 = bn(c2, 0.10)
    s2, b2 = bn(c2, -0.05)
    s3, b3 = bn(c2, 0.20)

    torch_layout = dict(w1=w1_oihw, w2=w2_oihw, w3=w3_oihw,
                        s1=s1, b1=b1, s2=s2, b2=b2, s3=s3, b3=b3)

    # Kernel layout: BN scale folded into the weights along the out-channel
    # axis (bf16 MXU operands); biases stay f32 for the elementwise tail.
    w1k = (w1_oihw[:, :, 0, 0] * s1[:, None]).T                      # (c1, c2)
    w2k = (w2_oihw[:, :, 0, 0] * s2[:, None]).T                      # (c1, c2)
    w3k = (jnp.transpose(w3_oihw * s3[:, None, None, None], (2, 3, 1, 0))
              .reshape(9 * c2, c2))                                  # [(ky*3+kx)*c2+ci, co]
    kernel_layout = dict(
        w1=w1k.astype(compute_dtype), w2=w2k.astype(compute_dtype),
        w3=w3k.astype(compute_dtype),
        b1=b1.reshape(1, c2), b2=b2.reshape(1, c2), b3=b3.reshape(1, c2))
    return torch_layout, kernel_layout


# ------------------------- pure-JAX reference (f32) -------------------------

def ref_forward(x, p):
    def conv_bn_silu(z, w, s, b, stride, pad):
        y = jax.lax.conv_general_dilated(
            z, w, (stride, stride), [(pad, pad), (pad, pad)],
            dimension_numbers=("NCHW", "OIHW", "NCHW"))
        y = y * s[None, :, None, None] + b[None, :, None, None]
        return y * jax.nn.sigmoid(y)

    x1 = jax.lax.reduce_window(x, -jnp.inf, jax.lax.max,
                               (1, 1, 2, 2), (1, 1, 2, 2), "VALID")
    x1 = conv_bn_silu(x1, p["w1"], p["s1"], p["b1"], 1, 0)
    x2 = conv_bn_silu(x, p["w2"], p["s2"], p["b2"], 1, 0)
    x2 = conv_bn_silu(x2, p["w3"], p["s3"], p["b3"], 2, 1)
    return jnp.concatenate([x2, x1], axis=1)


if __name__ == "__main__":
    key = jax.random.PRNGKey(0)
    kx, kp = jax.random.split(key)
    N, C1, C2, H, W = 2, 4, 8, 16, 16     # small demo; production C2 should be 128-aligned

    x = jax.random.normal(kx, (N, C1, H, W), jnp.float32)   # NCHW, PyTorch convention
    torch_params, kernel_params = make_params(C1, C2, kp)
    ref = ref_forward(x, torch_params)

    # Run once with the auto row tile (single tile here) and once with 2-row
    # tiles so the multi-tile / halo path is exercised and checked as well.
    for rt in (None, 2):
        out = jax.block_until_ready(transition_forward(x, kernel_params, row_tile=rt))
        assert out.shape == (N, 2 * C2, H // 2, W // 2), out.shape
        o32 = out.astype(jnp.float32)
        # bf16 MXU operands / bf16 output vs f32 reference -> bf16-level tolerance.
        err = float(jnp.max(jnp.abs(o32 - ref)))
        assert jnp.allclose(o32, ref, atol=5e-2, rtol=5e-2), (rt, err)
    print("KERNEL_OK")
</pallas_src>

<mosaic_0001>
module attributes {stable_mosaic.version = 11 : i64} {
  func.func @_transition_kernel(%arg0: i32, %arg1: i32, %arg2: memref<1x4x64x4xbf16, #tpu.memory_space<vmem>>, %arg3: memref<1x2x8x4xbf16, #tpu.memory_space<vmem>>, %arg4: memref<4x8xbf16, #tpu.memory_space<vmem>>, %arg5: memref<1x8xf32, #tpu.memory_space<vmem>>, %arg6: memref<4x8xbf16, #tpu.memory_space<vmem>>, %arg7: memref<1x8xf32, #tpu.memory_space<vmem>>, %arg8: memref<72x8xbf16, #tpu.memory_space<vmem>>, %arg9: memref<1x8xf32, #tpu.memory_space<vmem>>, %arg10: memref<1x64x16xbf16, #tpu.memory_space<vmem>>, %arg11: memref<3x80x8xbf16, #tpu.memory_space<vmem>>) attributes {dimension_semantics = [#tpu.dimension_semantics<parallel>, #tpu.dimension_semantics<parallel>], iteration_bounds = array<i64: 2, 1>, scalar_prefetch = 0 : i64, scratch_operands = 1 : i64, tpu.core_type = #tpu.core_type<tc>, window_params = [{transform_indices = @transform_0, window_bounds = array<i64: 1, 4, 64, 4>}, {transform_indices = @transform_1, window_bounds = array<i64: 1, 2, 8, 4>}, {pipeline_mode = #tpu.pipeline_mode<synchronous>, transform_indices = @transform_2, window_bounds = array<i64: 4, 8>}, {pipeline_mode = #tpu.pipeline_mode<synchronous>, transform_indices = @transform_3, window_bounds = array<i64: 1, 8>}, {pipeline_mode = #tpu.pipeline_mode<synchronous>, transform_indices = @transform_4, window_bounds = array<i64: 4, 8>}, {pipeline_mode = #tpu.pipeline_mode<synchronous>, transform_indices = @transform_5, window_bounds = array<i64: 1, 8>}, {pipeline_mode = #tpu.pipeline_mode<synchronous>, transform_indices = @transform_6, window_bounds = array<i64: 72, 8>}, {pipeline_mode = #tpu.pipeline_mode<synchronous>, transform_indices = @transform_7, window_bounds = array<i64: 1, 8>}, {transform_indices = @transform_8, window_bounds = array<i64: 1, 64, 16>}]} {
    %c0 = arith.constant 0 : index
    %c0_0 = arith.constant 0 : index
    %c0_1 = arith.constant 0 : index
    %c0_2 = arith.constant 0 : index
    %0 = vector.load %arg2[%c0, %c0_0, %c0_1, %c0_2] : memref<1x4x64x4xbf16, #tpu.memory_space<vmem>>, vector<1x1x64x4xbf16>
    %1 = vector.shape_cast %0 : vector<1x1x64x4xbf16> to vector<64x4xbf16>
    %c0_3 = arith.constant 0 : index
    %c1 = arith.constant 1 : index
    %c0_4 = arith.constant 0 : index
    %c0_5 = arith.constant 0 : index
    %2 = vector.load %arg2[%c0_3, %c1, %c0_4, %c0_5] : memref<1x4x64x4xbf16, #tpu.memory_space<vmem>>, vector<1x1x64x4xbf16>
    %3 = vector.shape_cast %2 : vector<1x1x64x4xbf16> to vector<64x4xbf16>
    %c0_6 = arith.constant 0 : index
    %c2 = arith.constant 2 : index
    %c0_7 = arith.constant 0 : index
    %c0_8 = arith.constant 0 : index
    %4 = vector.load %arg2[%c0_6, %c2, %c0_7, %c0_8] : memref<1x4x64x4xbf16, #tpu.memory_space<vmem>>, vector<1x1x64x4xbf16>
    %5 = vector.shape_cast %4 : vector<1x1x64x4xbf16> to vector<64x4xbf16>
    %c0_9 = arith.constant 0 : index
    %c3 = arith.constant 3 : index
    %c0_10 = arith.constant 0 : index
    %c0_11 = arith.constant 0 : index
    %6 = vector.load %arg2[%c0_9, %c3, %c0_10, %c0_11] : memref<1x4x64x4xbf16, #tpu.memory_space<vmem>>, vector<1x1x64x4xbf16>
    %7 = vector.shape_cast %6 : vector<1x1x64x4xbf16> to vector<64x4xbf16>
    %8 = arith.maximumf %1, %3 : vector<64x4xbf16>
    %9 = arith.maximumf %5, %7 : vector<64x4xbf16>
    %10 = arith.maximumf %8, %9 : vector<64x4xbf16>
    %c0_12 = arith.constant 0 : index
    %c0_13 = arith.constant 0 : index
    %11 = vector.load %arg4[%c0_12, %c0_13] : memref<4x8xbf16, #tpu.memory_space<vmem>>, vector<4x8xbf16>
    %cst = arith.constant dense<0.000000e+00> : vector<64x8xf32>
    %12 = tpu.matmul %10, %11, %cst {dimension_numbers = #tpu.dot_dimension_numbers<[1], [0], [0], [1], [0, 0, 1, 1], [], []>} : vector<64x4xbf16>, vector<4x8xbf16>, vector<64x8xf32> -> vector<64x8xf32>
    %c0_14 = arith.constant 0 : index
    %c0_15 = arith.constant 0 : index
    %13 = vector.load %arg5[%c0_14, %c0_15] : memref<1x8xf32, #tpu.memory_space<vmem>>, vector<1x8xf32>
    %14 = vector.broadcast %13 : vector<1x8xf32> to vector<64x8xf32>
    %15 = arith.addf %12, %14 : vector<64x8xf32>
    %16 = arith.negf %15 : vector<64x8xf32>
    %17 = math.exp %16 : vector<64x8xf32>
    %cst_16 = arith.constant 1.000000e+00 : f32
    %18 = vector.broadcast %cst_16 : f32 to vector<64x8xf32>
    %19 = arith.addf %18, %17 : vector<64x8xf32>
    %20 = arith.divf %18, %19 : vector<64x8xf32>
    %21 = arith.mulf %15, %20 : vector<64x8xf32>
    %22 = arith.truncf %21 : vector<64x8xf32> to vector<64x8xbf16>
    %c0_17 = arith.constant 0 : index
    %c0_18 = arith.constant 0 : index
    %c8 = arith.constant 8 : index
    %23 = vector.load %arg10[%c0_17, %c0_18, %c8] : memref<1x64x16xbf16, #tpu.memory_space<vmem>>, vector<1x64x8xbf16>
    %24 = vector.shape_cast %23 : vector<1x64x8xbf16> to vector<64x8xbf16>
    %25 = vector.shape_cast %22 : vector<64x8xbf16> to vector<1x64x8xbf16>
    tpu.vector_store %arg10[%c0_17, %c0_18, %c8], %25 {strides = array<i32>} : memref<1x64x16xbf16, #tpu.memory_space<vmem>>, vector<1x64x8xbf16>,
    %cst_19 = arith.constant 0.000000e+00 : bf16
    %26 = vector.broadcast %cst_19 : bf16 to vector<3x16x8xbf16>
    %c0_20 = arith.constant 0 : index
    %c0_21 = arith.constant 0 : index
    %c0_22 = arith.constant 0 : index
    %27 = vector.load %arg11[%c0_20, %c0_21, %c0_22] : memref<3x80x8xbf16, #tpu.memory_space<vmem>>, vector<3x16x8xbf16>
    tpu.vector_store %arg11[%c0_20, %c0_21, %c0_22], %26 {strides = array<i32>} : memref<3x80x8xbf16, #tpu.memory_space<vmem>>, vector<3x16x8xbf16>,
    %c0_i32 = arith.constant 0 : i32
    %28 = arith.cmpi sgt, %arg1, %c0_i32 : i32
    %c0_23 = arith.constant 0 : index
    %c0_24 = arith.constant 0 : index
    %29 = vector.load %arg6[%c0_23, %c0_24] : memref<4x8xbf16, #tpu.memory_space<vmem>>, vector<4x8xbf16>
    %cst_25 = arith.constant dense<0.000000e+00> : vector<64x8xf32>
    %30 = tpu.matmul %1, %29, %cst_25 {dimension_numbers = #tpu.dot_dimension_numbers<[1], [0], [0], [1], [0, 0, 1, 1], [], []>} : vector<64x4xbf16>, vector<4x8xbf16>, vector<64x8xf32> -> vector<64x8xf32>
    %c0_26 = arith.constant 0 : index
    %c0_27 = arith.constant 0 : index
    %31 = vector.load %arg7[%c0_26, %c0_27] : memref<1x8xf32, #tpu.memory_space<vmem>>, vector<1x8xf32>
    %32 = vector.broadcast %31 : vector<1x8xf32> to vector<64x8xf32>
    %33 = arith.addf %30, %32 : vector<64x8xf32>
    %34 = arith.truncf %33 : vector<64x8xf32> to vector<64x8xbf16>
    %35 = arith.negf %34 : vector<64x8xbf16>
    %36 = math.exp %35 : vector<64x8xbf16>
    %cst_28 = arith.constant 1.000000e+00 : bf16
    %37 = vector.broadcast %cst_28 : bf16 to vector<64x8xbf16>
    %38 = arith.addf %37, %36 : vector<64x8xbf16>
    %39 = arith.divf %37, %38 : vector<64x8xbf16>
    %40 = arith.mulf %34, %39 : vector<64x8xbf16>
    %c0_29 = arith.constant 0 : index
    %c0_30 = arith.constant 0 : index
    %41 = vector.load %arg6[%c0_29, %c0_30] : memref<4x8xbf16, #tpu.memory_space<vmem>>, vector<4x8xbf16>
    %cst_31 = arith.constant dense<0.000000e+00> : vector<64x8xf32>
    %42 = tpu.matmul %3, %41, %cst_31 {dimension_numbers = #tpu.dot_dimension_numbers<[1], [0], [0], [1], [0, 0, 1, 1], [], []>} : vector<64x4xbf16>, vector<4x8xbf16>, vector<64x8xf32> -> vector<64x8xf32>
    %c0_32 = arith.constant 0 : index
    %c0_33 = arith.constant 0 : index
    %43 = vector.load %arg7[%c0_32, %c0_33] : memref<1x8xf32, #tpu.memory_space<vmem>>, vector<1x8xf32>
    %44 = vector.broadcast %43 : vector<1x8xf32> to vector<64x8xf32>
    %45 = arith.addf %42, %44 : vector<64x8xf32>
    %46 = arith.truncf %45 : vector<64x8xf32> to vector<64x8xbf16>
    %47 = arith.negf %46 : vector<64x8xbf16>
    %48 = math.exp %47 : vector<64x8xbf16>
    %cst_34 = arith.constant 1.000000e+00 : bf16
    %49 = vector.broadcast %cst_34 : bf16 to vector<64x8xbf16>
    %50 = arith.addf %49, %48 : vector<64x8xbf16>
    %51 = arith.divf %49, %50 : vector<64x8xbf16>
    %52 = arith.mulf %46, %51 : vector<64x8xbf16>
    %c0_35 = arith.constant 0 : index
    %c16 = arith.constant 16 : index
    %c0_36 = arith.constant 0 : index
    %53 = vector.load %arg11[%c0_35, %c16, %c0_36] : memref<3x80x8xbf16, #tpu.memory_space<vmem>>, vector<1x64x8xbf16>
    %54 = vector.shape_cast %53 : vector<1x64x8xbf16> to vector<64x8xbf16>
    %55 = vector.shape_cast %52 : vector<64x8xbf16> to vector<1x64x8xbf16>
    tpu.vector_store %arg11[%c0_35, %c16, %c0_36], %55 {strides = array<i32>} : memref<3x80x8xbf16, #tpu.memory_space<vmem>>, vector<1x64x8xbf16>,
    %c0_37 = arith.constant 0 : index
    %c0_38 = arith.constant 0 : index
    %56 = vector.load %arg6[%c0_37, %c0_38] : memref<4x8xbf16, #tpu.memory_space<vmem>>, vector<4x8xbf16>
    %cst_39 = arith.constant dense<0.000000e+00> : vector<64x8xf32>
    %57 = tpu.matmul %5, %56, %cst_39 {dimension_numbers = #tpu.dot_dimension_numbers<[1], [0], [0], [1], [0, 0, 1, 1], [], []>} : vector<64x4xbf16>, vector<4x8xbf16>, vector<64x8xf32> -> vector<64x8xf32>
    %c0_40 = arith.constant 0 : index
    %c0_41 = arith.constant 0 : index
    %58 = vector.load %arg7[%c0_40, %c0_41] : memref<1x8xf32, #tpu.memory_space<vmem>>, vector<1x8xf32>
    %59 = vector.broadcast %58 : vector<1x8xf32> to vector<64x8xf32>
    %60 = arith.addf %57, %59 : vector<64x8xf32>
    %61 = arith.truncf %60 : vector<64x8xf32> to vector<64x8xbf16>
    %62 = arith.negf %61 : vector<64x8xbf16>
    %63 = math.exp %62 : vector<64x8xbf16>
    %cst_42 = arith.constant 1.000000e+00 : bf16
    %64 = vector.broadcast %cst_42 : bf16 to vector<64x8xbf16>
    %65 = arith.addf %64, %63 : vector<64x8xbf16>
    %66 = arith.divf %64, %65 : vector<64x8xbf16>
    %67 = arith.mulf %61, %66 : vector<64x8xbf16>
    %c1_43 = arith.constant 1 : index
    %c16_44 = arith.constant 16 : index
    %c0_45 = arith.constant 0 : index
    %68 = vector.load %arg11[%c1_43, %c16_44, %c0_45] : memref<3x80x8xbf16, #tpu.memory_space<vmem>>, vector<1x64x8xbf16>
    %69 = vector.shape_cast %68 : vector<1x64x8xbf16> to vector<64x8xbf16>
    %70 = vector.shape_cast %67 : vector<64x8xbf16> to vector<1x64x8xbf16>
    tpu.vector_store %arg11[%c1_43, %c16_44, %c0_45], %70 {strides = array<i32>} : memref<3x80x8xbf16, #tpu.memory_space<vmem>>, vector<1x64x8xbf16>,
    %c0_46 = arith.constant 0 : index
    %c0_47 = arith.constant 0 : index
    %71 = vector.load %arg6[%c0_46, %c0_47] : memref<4x8xbf16, #tpu.memory_space<vmem>>, vector<4x8xbf16>
    %cst_48 = arith.constant dense<0.000000e+00> : vector<64x8xf32>
    %72 = tpu.matmul %7, %71, %cst_48 {dimension_numbers = #tpu.dot_dimension_numbers<[1], [0], [0], [1], [0, 0, 1, 1], [], []>} : vector<64x4xbf16>, vector<4x8xbf16>, vector<64x8xf32> -> vector<64x8xf32>
    %c0_49 = arith.constant 0 : index
    %c0_50 = arith.constant 0 : index
    %73 = vector.load %arg7[%c0_49, %c0_50] : memref<1x8xf32, #tpu.memory_space<vmem>>, vector<1x8xf32>
    %74 = vector.broadcast %73 : vector<1x8xf32> to vector<64x8xf32>
    %75 = arith.addf %72, %74 : vector<64x8xf32>
    %76 = arith.truncf %75 : vector<64x8xf32> to vector<64x8xbf16>
    %77 = arith.negf %76 : vector<64x8xbf16>
    %78 = math.exp %77 : vector<64x8xbf16>
    %cst_51 = arith.constant 1.000000e+00 : bf16
    %79 = vector.broadcast %cst_51 : bf16 to vector<64x8xbf16>
    %80 = arith.addf %79, %78 : vector<64x8xbf16>
    %81 = arith.divf %79, %80 : vector<64x8xbf16>
    %82 = arith.mulf %76, %81 : vector<64x8xbf16>
    %c2_52 = arith.constant 2 : index
    %c16_53 = arith.constant 16 : index
    %c0_54 = arith.constant 0 : index
    %83 = vector.load %arg11[%c2_52, %c16_53, %c0_54] : memref<3x80x8xbf16, #tpu.memory_space<vmem>>, vector<1x64x8xbf16>
    %84 = vector.shape_cast %83 : vector<1x64x8xbf16> to vector<64x8xbf16>
    %85 = vector.shape_cast %82 : vector<64x8xbf16> to vector<1x64x8xbf16>
    tpu.vector_store %arg11[%c2_52, %c16_53, %c0_54], %85 {strides = array<i32>} : memref<3x80x8xbf16, #tpu.memory_space<vmem>>, vector<1x64x8xbf16>,
    %c0_55 = arith.constant 0 : index
    %c0_56 = arith.constant 0 : index
    %c0_57 = arith.constant 0 : index
    %c0_58 = arith.constant 0 : index
    %86 = vector.load %arg3[%c0_55, %c0_56, %c0_57, %c0_58] : memref<1x2x8x4xbf16, #tpu.memory_space<vmem>>, vector<1x1x8x4xbf16>
    %87 = vector.shape_cast %86 : vector<1x1x8x4xbf16> to vector<8x4xbf16>
    %c0_59 = arith.constant 0 : index
    %c0_60 = arith.constant 0 : index
    %88 = vector.load %arg6[%c0_59, %c0_60] : memref<4x8xbf16, #tpu.memory_space<vmem>>, vector<4x8xbf16>
    %cst_61 = arith.constant dense<0.000000e+00> : vector<8x8xf32>
    %89 = tpu.matmul %87, %88, %cst_61 {dimension_numbers = #tpu.dot_dimension_numbers<[1], [0], [0], [1], [0, 0, 1, 1], [], []>} : vector<8x4xbf16>, vector<4x8xbf16>, vector<8x8xf32> -> vector<8x8xf32>
    %c0_62 = arith.constant 0 : index
    %c0_63 = arith.constant 0 : index
    %90 = vector.load %arg7[%c0_62, %c0_63] : memref<1x8xf32, #tpu.memory_space<vmem>>, vector<1x8xf32>
    %91 = vector.broadcast %90 : vector<1x8xf32> to vector<8x8xf32>
    %92 = arith.addf %89, %91 : vector<8x8xf32>
    %93 = arith.truncf %92 : vector<8x8xf32> to vector<8x8xbf16>
    %94 = arith.negf %93 : vector<8x8xbf16>
    %95 = math.exp %94 : vector<8x8xbf16>
    %cst_64 = arith.constant 1.000000e+00 : bf16
    %96 = vector.broadcast %cst_64 : bf16 to vector<8x8xbf16>
    %97 = arith.addf %96, %95 : vector<8x8xbf16>
    %98 = arith.divf %96, %97 : vector<8x8xbf16>
    %99 = arith.mulf %93, %98 : vector<8x8xbf16>
    %cst_65 = arith.constant 0.000000e+00 : bf16
    %100 = vector.broadcast %cst_65 : bf16 to vector<8x8xbf16>
    %101 = arith.select %28, %99, %100 : vector<8x8xbf16>
    %c1_66 = arith.constant 1 : index
    %c8_67 = arith.constant 8 : index
    %c0_68 = arith.constant 0 : index
    %102 = vector.load %arg11[%c1_66, %c8_67, %c0_68] : memref<3x80x8xbf16, #tpu.memory_space<vmem>>, vector<1x8x8xbf16>
    %103 = vector.shape_cast %102 : vector<1x8x8xbf16> to vector<8x8xbf16>
    %104 = vector.shape_cast %101 : vector<8x8xbf16> to vector<1x8x8xbf16>
    tpu.vector_store %arg11[%c1_66, %c8_67, %c0_68], %104 {strides = array<i32>} : memref<3x80x8xbf16, #tpu.memory_space<vmem>>, vector<1x8x8xbf16>,
    %c0_69 = arith.constant 0 : index
    %c1_70 = arith.constant 1 : index
    %c0_71 = arith.constant 0 : index
    %c0_72 = arith.constant 0 : index
    %105 = vector.load %arg3[%c0_69, %c1_70, %c0_71, %c0_72] : memref<1x2x8x4xbf16, #tpu.memory_space<vmem>>, vector<1x1x8x4xbf16>
    %106 = vector.shape_cast %105 : vector<1x1x8x4xbf16> to vector<8x4xbf16>
    %c0_73 = arith.constant 0 : index
    %c0_74 = arith.constant 0 : index
    %107 = vector.load %arg6[%c0_73, %c0_74] : memref<4x8xbf16, #tpu.memory_space<vmem>>, vector<4x8xbf16>
    %cst_75 = arith.constant dense<0.000000e+00> : vector<8x8xf32>
    %108 = tpu.matmul %106, %107, %cst_75 {dimension_numbers = #tpu.dot_dimension_numbers<[1], [0], [0], [1], [0, 0, 1, 1], [], []>} : vector<8x4xbf16>, vector<4x8xbf16>, vector<8x8xf32> -> vector<8x8xf32>
    %c0_76 = arith.constant 0 : index
    %c0_77 = arith.constant 0 : index
    %109 = vector.load %arg7[%c0_76, %c0_77] : memref<1x8xf32, #tpu.memory_space<vmem>>, vector<1x8xf32>
    %110 = vector.broadcast %109 : vector<1x8xf32> to vector<8x8xf32>
    %111 = arith.addf %108, %110 : vector<8x8xf32>
    %112 = arith.truncf %111 : vector<8x8xf32> to vector<8x8xbf16>
    %113 = arith.negf %112 : vector<8x8xbf16>
    %114 = math.exp %113 : vector<8x8xbf16>
    %cst_78 = arith.constant 1.000000e+00 : bf16
    %115 = vector.broadcast %cst_78 : bf16 to vector<8x8xbf16>
    %116 = arith.addf %115, %114 : vector<8x8xbf16>
    %117 = arith.divf %115, %116 : vector<8x8xbf16>
    %118 = arith.mulf %112, %117 : vector<8x8xbf16>
    %cst_79 = arith.constant 0.000000e+00 : bf16
    %119 = vector.broadcast %cst_79 : bf16 to vector<8x8xbf16>
    %120 = arith.select %28, %118, %119 : vector<8x8xbf16>
    %c2_80 = arith.constant 2 : index
    %c8_81 = arith.constant 8 : index
    %c0_82 = arith.constant 0 : index
    %121 = vector.load %arg11[%c2_80, %c8_81, %c0_82] : memref<3x80x8xbf16, #tpu.memory_space<vmem>>, vector<1x8x8xbf16>
    %122 = vector.shape_cast %121 : vector<1x8x8xbf16> to vector<8x8xbf16>
    %123 = vector.shape_cast %120 : vector<8x8xbf16> to vector<1x8x8xbf16>
    tpu.vector_store %arg11[%c2_80, %c8_81, %c0_82], %123 {strides = array<i32>} : memref<3x80x8xbf16, #tpu.memory_space<vmem>>, vector<1x8x8xbf16>,
    %124 = tpu.iota {dimensions = array<i32: 0>} : vector<64x1xi32>
    %c8_i32 = arith.constant 8 : i32
    %c0_i32_83 = arith.constant 0 : i32
    %125 = arith.cmpi eq, %c8_i32, %c0_i32_83 : i32
    %c1_i32 = arith.constant 1 : i32
    %126 = arith.select %125, %c1_i32, %c8_i32 : i32
    %127 = vector.broadcast %126 : i32 to vector<64x1xi32>
    %128 = arith.remsi %124, %127 : vector<64x1xi32>
    %c0_i32_84 = arith.constant 0 : i32
    %129 = vector.broadcast %c0_i32_84 : i32 to vector<64x1xi32>
    %130 = arith.cmpi ne, %128, %129 : vector<64x1xi32>
    %c0_i32_85 = arith.constant 0 : i32
    %131 = vector.broadcast %c0_i32_85 : i32 to vector<64x1xi32>
    %132 = arith.cmpi slt, %128, %131 : vector<64x1xi32>
    %c0_i32_86 = arith.constant 0 : i32
    %133 = arith.cmpi slt, %126, %c0_i32_86 : i32
    %134 = vector.broadcast %133 : i1 to vector<64x1xi1>
    %135 = vector.broadcast %134 : vector<64x1xi1> to vector<64x1xi1>
    %136 = arith.xori %132, %135 : vector<64x1xi1>
    %137 = arith.andi %136, %130 : vector<64x1xi1>
    %138 = vector.broadcast %126 : i32 to vector<64x1xi32>
    %139 = arith.addi %128, %138 : vector<64x1xi32>
    %140 = arith.select %137, %139, %128 : vector<64x1xi1>, vector<64x1xi32>
    %c0_i32_87 = arith.constant 0 : i32
    %141 = vector.broadcast %c0_i32_87 : i32 to vector<64x1xi32>
    %142 = arith.cmpi ne, %140, %141 : vector<64x1xi32>
    %c32 = arith.constant 32 : index
    %c0_88 = arith.constant 0 : index
    %143 = vector.load %arg8[%c32, %c0_88] : memref<72x8xbf16, #tpu.memory_space<vmem>>, vector<8x8xbf16>
    %cst_89 = arith.constant dense<0.000000e+00> : vector<64x8xf32>
    %144 = tpu.matmul %40, %143, %cst_89 {dimension_numbers = #tpu.dot_dimension_numbers<[1], [0], [0], [1], [0, 0, 1, 1], [], []>} : vector<64x8xbf16>, vector<8x8xbf16>, vector<64x8xf32> -> vector<64x8xf32>
    %c40 = arith.constant 40 : index
    %c0_90 = arith.constant 0 : index
    %145 = vector.load %arg8[%c40, %c0_90] : memref<72x8xbf16, #tpu.memory_space<vmem>>, vector<8x8xbf16>
    %cst_91 = arith.constant dense<0.000000e+00> : vector<64x8xf32>
    %146 = tpu.matmul %52, %145, %cst_91 {dimension_numbers = #tpu.dot_dimension_numbers<[1], [0], [0], [1], [0, 0, 1, 1], [], []>} : vector<64x8xbf16>, vector<8x8xbf16>, vector<64x8xf32> -> vector<64x8xf32>
    %147 = arith.addf %144, %146 : vector<64x8xf32>
    %c0_92 = arith.constant 0 : index
    %c15 = arith.constant 15 : index
    %c0_93 = arith.constant 0 : index
    %148 = vector.load %arg11[%c0_92, %c15, %c0_93] : memref<3x80x8xbf16, #tpu.memory_space<vmem>>, vector<1x64x8xbf16>
    %149 = vector.shape_cast %148 : vector<1x64x8xbf16> to vector<64x8xbf16>
    %cst_94 = arith.constant 0.000000e+00 : bf16
    %150 = vector.broadcast %cst_94 : bf16 to vector<64x8xbf16>
    %151 = vector.shape_cast %142 : vector<64x1xi1> to vector<64x1xi1>
    %152 = vector.broadcast %151 : vector<64x1xi1> to vector<64x8xi1>
    %153 = arith.select %152, %149, %150 : vector<64x8xi1>, vector<64x8xbf16>
    %c24 = arith.constant 24 : index
    %c0_95 = arith.constant 0 : index
    %154 = vector.load %arg8[%c24, %c0_95] : memref<72x8xbf16, #tpu.memory_space<vmem>>, vector<8x8xbf16>
    %cst_96 = arith.constant dense<0.000000e+00> : vector<64x8xf32>
    %155 = tpu.matmul %153, %154, %cst_96 {dimension_numbers = #tpu.dot_dimension_numbers<[1], [0], [0], [1], [0, 0, 1, 1], [], []>} : vector<64x8xbf16>, vector<8x8xbf16>, vector<64x8xf32> -> vector<64x8xf32>
    %156 = arith.addf %147, %155 : vector<64x8xf32>
    %c56 = arith.constant 56 : index
    %c0_97 = arith.constant 0 : index
    %157 = vector.load %arg8[%c56, %c0_97] : memref<72x8xbf16, #tpu.memory_space<vmem>>, vector<8x8xbf16>
    %cst_98 = arith.constant dense<0.000000e+00> : vector<64x8xf32>
    %158 = tpu.matmul %67, %157, %cst_98 {dimension_numbers = #tpu.dot_dimension_numbers<[1], [0], [0], [1], [0, 0, 1, 1], [], []>} : vector<64x8xbf16>, vector<8x8xbf16>, vector<64x8xf32> -> vector<64x8xf32>
    %159 = arith.addf %156, %158 : vector<64x8xf32>
    %c64 = arith.constant 64 : index
    %c0_99 = arith.constant 0 : index
    %160 = vector.load %arg8[%c64, %c0_99] : memref<72x8xbf16, #tpu.memory_space<vmem>>, vector<8x8xbf16>
    %cst_100 = arith.constant dense<0.000000e+00> : vector<64x8xf32>
    %161 = tpu.matmul %82, %160, %cst_100 {dimension_numbers = #tpu.dot_dimension_numbers<[1], [0], [0], [1], [0, 0, 1, 1], [], []>} : vector<64x8xbf16>, vector<8x8xbf16>, vector<64x8xf32> -> vector<64x8xf32>
    %162 = arith.addf %159, %161 : vector<64x8xf32>
    %c2_101 = arith.constant 2 : index
    %c15_102 = arith.constant 15 : index
    %c0_103 = arith.constant 0 : index
    %163 = vector.load %arg11[%c2_101, %c15_102, %c0_103] : memref<3x80x8xbf16, #tpu.memory_space<vmem>>, vector<1x64x8xbf16>
    %164 = vector.shape_cast %163 : vector<1x64x8xbf16> to vector<64x8xbf16>
    %cst_104 = arith.constant 0.000000e+00 : bf16
    %165 = vector.broadcast %cst_104 : bf16 to vector<64x8xbf16>
    %166 = vector.shape_cast %142 : vector<64x1xi1> to vector<64x1xi1>
    %167 = vector.broadcast %166 : vector<64x1xi1> to vector<64x8xi1>
    %168 = arith.select %167, %164, %165 : vector<64x8xi1>, vector<64x8xbf16>
    %c48 = arith.constant 48 : index
    %c0_105 = arith.constant 0 : index
    %169 = vector.load %arg8[%c48, %c0_105] : memref<72x8xbf16, #tpu.memory_space<vmem>>, vector<8x8xbf16>
    %cst_106 = arith.constant dense<0.000000e+00> : vector<64x8xf32>
    %170 = tpu.matmul %168, %169, %cst_106 {dimension_numbers = #tpu.dot_dimension_numbers<[1], [0], [0], [1], [0, 0, 1, 1], [], []>} : vector<64x8xbf16>, vector<8x8xbf16>, vector<64x8xf32> -> vector<64x8xf32>
    %171 = arith.addf %162, %170 : vector<64x8xf32>
    %c1_107 = arith.constant 1 : index
    %c8_108 = arith.constant 8 : index
    %c0_109 = arith.constant 0 : index
    %172 = vector.load %arg11[%c1_107, %c8_108, %c0_109] : memref<3x80x8xbf16, #tpu.memory_space<vmem>>, vector<1x64x8xbf16>
    %173 = vector.shape_cast %172 : vector<1x64x8xbf16> to vector<64x8xbf16>
    %c8_110 = arith.constant 8 : index
    %c0_111 = arith.constant 0 : index
    %174 = vector.load %arg8[%c8_110, %c0_111] : memref<72x8xbf16, #tpu.memory_space<vmem>>, vector<8x8xbf16>
    %cst_112 = arith.constant dense<0.000000e+00> : vector<64x8xf32>
    %175 = tpu.matmul %173, %174, %cst_112 {dimension_numbers = #tpu.dot_dimension_numbers<[1], [0], [0], [1], [0, 0, 1, 1], [], []>} : vector<64x8xbf16>, vector<8x8xbf16>, vector<64x8xf32> -> vector<64x8xf32>
    %176 = arith.addf %171, %175 : vector<64x8xf32>
    %c2_113 = arith.constant 2 : index
    %c8_114 = arith.constant 8 : index
    %c0_115 = arith.constant 0 : index
    %177 = vector.load %arg11[%c2_113, %c8_114, %c0_115] : memref<3x80x8xbf16, #tpu.memory_space<vmem>>, vector<1x64x8xbf16>
    %178 = vector.shape_cast %177 : vector<1x64x8xbf16> to vector<64x8xbf16>
    %c16_116 = arith.constant 16 : index
    %c0_117 = arith.constant 0 : index
    %179 = vector.load %arg8[%c16_116, %c0_117] : memref<72x8xbf16, #tpu.memory_space<vmem>>, vector<8x8xbf16>
    %cst_118 = arith.constant dense<0.000000e+00> : vector<64x8xf32>
    %180 = tpu.matmul %178, %179, %cst_118 {dimension_numbers = #tpu.dot_dimension_numbers<[1], [0], [0], [1], [0, 0, 1, 1], [], []>} : vector<64x8xbf16>, vector<8x8xbf16>, vector<64x8xf32> -> vector<64x8xf32>
    %181 = arith.addf %176, %180 : vector<64x8xf32>
    %c2_119 = arith.constant 2 : index
    %c7 = arith.constant 7 : index
    %c0_120 = arith.constant 0 : index
    %182 = vector.load %arg11[%c2_119, %c7, %c0_120] : memref<3x80x8xbf16, #tpu.memory_space<vmem>>, vector<1x64x8xbf16>
    %183 = vector.shape_cast %182 : vector<1x64x8xbf16> to vector<64x8xbf16>
    %cst_121 = arith.constant 0.000000e+00 : bf16
    %184 = vector.broadcast %cst_121 : bf16 to vector<64x8xbf16>
    %185 = vector.shape_cast %142 : vector<64x1xi1> to vector<64x1xi1>
    %186 = vector.broadcast %185 : vector<64x1xi1> to vector<64x8xi1>
    %187 = arith.select %186, %183, %184 : vector<64x8xi1>, vector<64x8xbf16>
    %c0_122 = arith.constant 0 : index
    %c0_123 = arith.constant 0 : index
    %188 = vector.load %arg8[%c0_122, %c0_123] : memref<72x8xbf16, #tpu.memory_space<vmem>>, vector<8x8xbf16>
    %cst_124 = arith.constant dense<0.000000e+00> : vector<64x8xf32>
    %189 = tpu.matmul %187, %188, %cst_124 {dimension_numbers = #tpu.dot_dimension_numbers<[1], [0], [0], [1], [0, 0, 1, 1], [], []>} : vector<64x8xbf16>, vector<8x8xbf16>, vector<64x8xf32> -> vector<64x8xf32>
    %190 = arith.addf %181, %189 : vector<64x8xf32>
    %c0_125 = arith.constant 0 : index
    %c0_126 = arith.constant 0 : index
    %191 = vector.load %arg9[%c0_125, %c0_126] : memref<1x8xf32, #tpu.memory_space<vmem>>, vector<1x8xf32>
    %192 = vector.broadcast %191 : vector<1x8xf32> to vector<64x8xf32>
    %193 = arith.addf %190, %192 : vector<64x8xf32>
    %194 = arith.negf %193 : vector<64x8xf32>
    %195 = math.exp %194 : vector<64x8xf32>
    %cst_127 = arith.constant 1.000000e+00 : f32
    %196 = vector.broadcast %cst_127 : f32 to vector<64x8xf32>
    %197 = arith.addf %196, %195 : vector<64x8xf32>
    %198 = arith.divf %196, %197 : vector<64x8xf32>
    %199 = arith.mulf %193, %198 : vector<64x8xf32>
    %200 = arith.truncf %199 : vector<64x8xf32> to vector<64x8xbf16>
    %c0_128 = arith.constant 0 : index
    %c0_129 = arith.constant 0 : index
    %c0_130 = arith.constant 0 : index
    %201 = vector.load %arg10[%c0_128, %c0_129, %c0_130] : memref<1x64x16xbf16, #tpu.memory_space<vmem>>, vector<1x64x8xbf16>
    %202 = vector.shape_cast %201 : vector<1x64x8xbf16> to vector<64x8xbf16>
    %203 = vector.shape_cast %200 : vector<64x8xbf16> to vector<1x64x8xbf16>
    tpu.vector_store %arg10[%c0_128, %c0_129, %c0_130], %203 {strides = array<i32>} : memref<1x64x16xbf16, #tpu.memory_space<vmem>>, vector<1x64x8xbf16>,
    return
  }
  func.func @transform_0(%arg0: i32, %arg1: i32) -> (i32, i32, i32, i32) {
    %c0_i32 = arith.constant 0 : i32
    %c0_i32_0 = arith.constant 0 : i32
    %c0_i32_1 = arith.constant 0 : i32
    return %arg0, %c0_i32, %arg1, %c0_i32_0 : i32, i32, i32, i32
  }
  func.func @transform_1(%arg0: i32, %arg1: i32) -> (i32, i32, i32, i32) {
    %c8_i32 = arith.constant 8 : i32
    %0 = arith.muli %arg1, %c8_i32 : i32
    %c1_i32 = arith.constant 1 : i32
    %1 = arith.subi %0, %c1_i32 : i32
    %c0_i32 = arith.constant 0 : i32
    %2 = arith.maxsi %1, %c0_i32 : i32
    %c1_i32_0 = arith.constant 1 : i32
    %c0_i32_1 = arith.constant 0 : i32
    %c0_i32_2 = arith.constant 0 : i32
    return %arg0, %c1_i32_0, %2, %c0_i32_1 : i32, i32, i32, i32
  }
  func.func @transform_2(%arg0: i32, %arg1: i32) -> (i32, i32) {
    %c0_i32 = arith.constant 0 : i32
    %c0_i32_0 = arith.constant 0 : i32
    %c0_i32_1 = arith.constant 0 : i32
    return %c0_i32, %c0_i32_0 : i32, i32
  }
  func.func @transform_3(%arg0: i32, %arg1: i32) -> (i32, i32) {
    %c0_i32 = arith.constant 0 : i32
    %c0_i32_0 = arith.constant 0 : i32
    %c0_i32_1 = arith.constant 0 : i32
    return %c0_i32, %c0_i32_0 : i32, i32
  }
  func.func @transform_4(%arg0: i32, %arg1: i32) -> (i32, i32) {
    %c0_i32 = arith.constant 0 : i32
    %c0_i32_0 = arith.constant 0 : i32
    %c0_i32_1 = arith.constant 0 : i32
    return %c0_i32, %c0_i32_0 : i32, i32
  }
  func.func @transform_5(%arg0: i32, %arg1: i32) -> (i32, i32) {
    %c0_i32 = arith.constant 0 : i32
    %c0_i32_0 = arith.constant 0 : i32
    %c0_i32_1 = arith.constant 0 : i32
    return %c0_i32, %c0_i32_0 : i32, i32
  }
  func.func @transform_6(%arg0: i32, %arg1: i32) -> (i32, i32) {
    %c0_i32 = arith.constant 0 : i32
    %c0_i32_0 = arith.constant 0 : i32
    %c0_i32_1 = arith.constant 0 : i32
    return %c0_i32, %c0_i32_0 : i32, i32
  }
  func.func @transform_7(%arg0: i32, %arg1: i32) -> (i32, i32) {
    %c0_i32 = arith.constant 0 : i32
    %c0_i32_0 = arith.constant 0 : i32
    %c0_i32_1 = arith.constant 0 : i32
    return %c0_i32, %c0_i32_0 : i32, i32
  }
  func.func @transform_8(%arg0: i32, %arg1: i32) -> (i32, i32, i32) {
    %c0_i32 = arith.constant 0 : i32
    %c0_i32_0 = arith.constant 0 : i32
    return %arg0, %arg1, %c0_i32 : i32, i32, i32
  }
}

</mosaic_0001>

<bundles_post_ra>
// kernel: tpu_custom_call.1
= control target key start
LH: loop header
LB: loop body
LE: loop exit
PB: predicated region body
PF: predicated region fallthrough
CT: control target
= control target key end

     0   :  { %s3629_s27 = smov 0   ;;  %s3631_s28 = smov 0   ;;  %s4364_s0 = inlined_call_operand.vmem [shape: bf16[2,4,64,4], index: 0, kind: input, shape index: {}]   ;;  %s4365_s1 = inlined_call_operand.vmem [shape: bf16[2,4,64,4], index: 1, kind: input, shape index: {}]   ;;  %s4366_s2 = inlined_call_operand.vmem [shape: bf16[4,8], index: 2, kind: input, shape index: {}]   ;;  %s4367_s3 = inlined_call_operand.vmem [shape: f32[1,8], index: 3, kind: input, shape index: {}]   ;;  %s4368_s4 = inlined_call_operand.vmem [shape: bf16[4,8], index: 4, kind: input, shape index: {}]   ;;  %s4369_s5 = inlined_call_operand.vmem [shape: f32[1,8], index: 5, kind: input, shape index: {}]   ;;  %s4370_s6 = inlined_call_operand.vmem [shape: bf16[72,8], index: 6, kind: input, shape index: {}]   ;;  %s4371_s7 = inlined_call_operand.vmem [shape: f32[1,8], index: 7, kind: input, shape index: {}]   ;;  %s4372_s8 = inlined_call_operand.vmem [shape: bf16[2,64,16], index: 8, kind: output, shape index: {}]  }
   0x1   :  { %s3633_s29 = smov 0   ;;  %s3635_s30 = smov 0  }
   0x2   :  { %s3637_s9 = smov 0  }
   0x3 LB: > { %s30_s10 = sadd.s32 1, %s3574_s30  ;;  %p82_p1 = scmp.ne.s32.totalorder %s3566_s28, %s3562_s27  ;;  %s3578_s9 = sphi %s3637_s9, %s18_s9   ;;  %s3574_s30 = sphi %s3635_s30, %s4382_s30   ;;  %s3570_s29 = sphi %s3633_s29, %s4381_s29   ;;  %s3566_s28 = sphi %s3631_s28, %s4380_s28   ;;  %s3562_s27 = sphi %s3629_s27, %s4379_s27  }
   0x4   : > { %p32_p0 = scmp.ge.s32.totalorder %s30_s10, 2  ;;  %p83_p2 = scmp.eq.s32.totalorder %s3578_s9, 0 }
   0x5   : > { %s75_s12 = sadd.s32 1, %s3566_s28  ;;  %p2848_p5 = scmp.ge.s32.totalorder %s3578_s9, 2 }
   0x6   : > { %s4384_s10 = smov (%p32_p0, %s30_s10), 0  ;;  %p84_p3 = por %p83_p2, %p82_p1 }
   0x7   : > { %s70_s11 = ssub.s32 %s3574_s30, %s4384_s10  ;;  %280 = sbr.rel (%p2848_p5) target bundleno = 21 (0x15), region = 40 }
   0x8   : > { %p73_p4 = scmp.eq.s32.totalorder %s70_s11, 0 }
   0xa   : > { %s3664_s13 = scalar_select %p73_p4, %s3566_s28, %s75_s12  }
   0xe   : > { %296 = sbr.rel (!%p84_p3) target bundleno = 21 (0x15), region = 48  ;;  %s298_s14 = sand.u32 (%p84_p3), 1, %s3566_s28  }
   0xf   : > { %s3026_s15 = sshll.u32 (%p84_p3), %s3574_s30, 7  ;;  %s2849_s16 = sshll.u32 (%p84_p3), %s298_s14, 3 }
  0x10   : > { %s2776_s19 = scalar_lea.vmem (%p84_p3), %s4365_s1, %s3026_s15  ;;  %s300_s20 = scalar_lea.vmem (%p84_p3), [#allocation3], %s2849_s16 }
  0x11   : > { %v2852_v0 = vld [vmem:[%s2776_s19 + $0x40] sm:$0xf] (%p84_p3) }
  0x12   : > { %v2853_v1 = vld [vmem:[%s2776_s19 + $0x60] sm:$0xf] (%p84_p3)  ;;  %326 = vst [vmem:[%s300_s20] sm:$0xf] (%p84_p3), %v2852_v0 }
  0x13   : > { %328 = vst [vmem:[%s300_s20 + $0x4] sm:$0xf] (%p84_p3), %v2853_v1 }
  0x15 PF: > { %p2854_p6 = scmp.ge.s32.totalorder %s3578_s9, 1  ;;  %p354_p7 = scmp.lt.s32.totalorder %s3578_s9, 3 }
  0x17   : > { %p355_p8 = pnand %p2854_p6, %p354_p7 }
  0x18   : > { %v494_v2 = vld [vmem:[%s4366_s2] sm:$0x3] (!%p355_p8)  ;;  %vm535_vm0 = vcmask (!%p355_p8), 1041408   ;;  %p408_p9 = scmp.lt.s32.totalorder (!%p355_p8), %s3570_s29, 1  ;;  %vm522_vm1 = vcmask (!%p355_p8), 31744   ;;  %vm1571_vm2 = vcmask (!%p355_p8), 1043456  }
  0x19   : > { %358 = sbr.rel (%p355_p8) target bundleno = 701 (0x2bd), region = 89  ;;  %3337 = vmatprep.subr.msk.bf16.mxu1 (!%p355_p8), %vm535_vm0, %v494_v2  ;;  %v537_v3 = vsel (!%p355_p8), %vm535_vm0, %v494_v2, 0  ;;  %v3683_v4 = vld [vmem:[%s4368_s4] sm:$0x3] (!%p355_p8)  ;;  %s361_s22 = sand.u32 (!%p355_p8), 1, %s3562_s27   ;;  %vm3581_vm3 = vmmov (!%p355_p8), 0  }
  0x1a   : > { %3120 = vmatpush3.bf16.msra.mxu1 (!%p355_p8), %v537_v3  ;;  %v3698_v5 = vsel (!%p355_p8), %vm535_vm0, %v3683_v4, 0  ;;  %s2855_s23 = sshll.u32 (!%p355_p8), %s361_s22, 3  ;;  %vm717_vm4 = vcmask (!%p355_p8), 64512   ;;  %vm1372_vm7 = vcmask (!%p355_p8), 64516   ;;  %s3583_s19 = smov (!%p355_p8), 8  }
  0x1b   : > { %3338 = vmatprep.subr.msk.bf16.mxu1 (!%p355_p8), %vm535_vm0, %v3683_v4  ;;  %s363_s24 = scalar_lea.vmem (!%p355_p8), [#allocation3], %s2855_s23 }
  0x20   : > { %s4386_s29 = smov (!%p408_p9, %s3570_s29), 1 }
  0x21   : > { %s3027_s25 = sshll.u32 %s4386_s29, 7  ;;  %s3028_s14 = sshll.u32 %s4386_s29, 5 }
  0x22   : > { %s3694_s12 = scalar_lea.vmem %s4364_s0, %s3027_s25  ;;  %s4279_s17 = scalar_lea.vmem %s4372_s8, %s3028_s14 }
  0x23   : > { %v3701_v6 = vld [vmem:[%s3694_s12] sm:$0xf]  ;;  %v3704_v7 = vld [vmem:[%s3694_s12 + $0x4] sm:$0xf]  ;;  %v3729_v16 = vld [vmem:[%s3694_s12 + $0x8] sm:$0xf] }
  0x24   : > { %v3707_v8 = vld [vmem:[%s3694_s12 + $0x20] sm:$0xf]  ;;  %v3710_v9 = vld [vmem:[%s3694_s12 + $0x24] sm:$0xf]  ;;  %v3736_v19 = vld [vmem:[%s3694_s12 + $0xc] sm:$0xf] }
  0x25   : > { %v3713_v10 = vld [vmem:[%s3694_s12 + $0x40] sm:$0xf]  ;;  %v3716_v11 = vld [vmem:[%s3694_s12 + $0x44] sm:$0xf]  ;;  %v470_v12 = vmax.bf16 %v3707_v8, %v3701_v6  ;;  %v471_v15 = vmax.bf16 %v3710_v9, %v3704_v7  ;;  %v3739_v20 = vld [vmem:[%s3694_s12 + $0x28] sm:$0xf] }
  0x26   : > { %v3721_v13 = vld [vmem:[%s3694_s12 + $0x60] sm:$0xf]  ;;  %v3724_v14 = vld [vmem:[%s3694_s12 + $0x64] sm:$0xf]  ;;  %v3742_v21 = vld [vmem:[%s3694_s12 + $0x2c] sm:$0xf]  ;;  %v472_v26 = vmax.bf16 %v3739_v20, %v3729_v16 }
  0x27   : > { %v478_v17 = vmax.bf16 %v3721_v13, %v3713_v10  ;;  %v479_v18 = vmax.bf16 %v3724_v14, %v3716_v11  ;;  %v2948_v22 = vcombine.low %v3721_v13, %v3724_v14  ;;  %v3747_v23 = vld [vmem:[%s3694_s12 + $0x48] sm:$0xf]  ;;  %v3750_v24 = vld [vmem:[%s3694_s12 + $0x4c] sm:$0xf]  ;;  %v473_v27 = vmax.bf16 %v3742_v21, %v3736_v19  ;;  %v439_v32 = vld [vmem:[%s3694_s12 + $0x10] sm:$0xf] }
  0x28   : > { %v3753_v25 = vld [vmem:[%s3694_s12 + $0x68] sm:$0xf]  ;;  %v3760_v30 = vld [vmem:[%s3694_s12 + $0x6c] sm:$0xf]  ;;  %v440_v33 = vld [vmem:[%s3694_s12 + $0x14] sm:$0xf] }
  0x29   : > { %v486_v28 = vmax.bf16 %v478_v17, %v470_v12  ;;  %v487_v29 = vmax.bf16 %v479_v18, %v471_v15  ;;  %v480_v31 = vmax.bf16 %v3753_v25, %v3747_v23  ;;  %v481_v34 = vmax.bf16 %v3760_v30, %v3750_v24  ;;  %v2864_v36 = vld [vmem:[%s3694_s12 + $0x30] sm:$0xf]  ;;  %v2865_v37 = vld [vmem:[%s3694_s12 + $0x34] sm:$0xf]  ;;  %v441_v49 = vld [vmem:[%s3694_s12 + $0x18] sm:$0xf] }
  0x2a   : > { %v2949_v35 = vcombine.low %v3753_v25, %v3760_v30  ;;  %v3773_v38 = vld [vmem:[%s3694_s12 + $0x50] sm:$0xf]  ;;  %v3776_v41 = vld [vmem:[%s3694_s12 + $0x54] sm:$0xf]  ;;  %v474_v44 = vmax.bf16 %v2864_v36, %v439_v32  ;;  %v475_v45 = vmax.bf16 %v2865_v37, %v440_v33  ;;  %v442_v50 = vld [vmem:[%s3694_s12 + $0x1c] sm:$0xf]  ;;  %v2910_v17 = vcombine.low %v3701_v6, %v3704_v7 }
  0x2b   : > { %v2885_v39 = vcombine.low %v486_v28, %v487_v29  ;;  %v488_v40 = vmax.bf16 %v480_v31, %v472_v26  ;;  %v3779_v42 = vld [vmem:[%s3694_s12 + $0x70] sm:$0xf]  ;;  %v3782_v43 = vld [vmem:[%s3694_s12 + $0x74] sm:$0xf]  ;;  %v489_v46 = vmax.bf16 %v481_v34, %v473_v27  ;;  %v2866_v51 = vld [vmem:[%s3694_s12 + $0x38] sm:$0xf]  ;;  %v2911_v18 = vcombine.low %v3729_v16, %v3736_v19 }
  0x2c   : > { %v482_v47 = vmax.bf16 %v3779_v42, %v3773_v38  ;;  %v483_v48 = vmax.bf16 %v3782_v43, %v3776_v41  ;;  %v2867_v52 = vld [vmem:[%s3694_s12 + $0x3c] sm:$0xf]  ;;  %v2874_v53 = vld [vmem:[%s3694_s12 + $0x58] sm:$0xf]  ;;  %v476_v55 = vmax.bf16 %v2866_v51, %v441_v49  ;;  %v2950_v56 = vcombine.low %v3779_v42, %v3782_v43  ;;  %v1003_v27 = vld [vmem:[%s4368_s4] sm:$0x3] }
  0x2d   : > { %3121 = vmatprep.mubr.msk.bf16.mxu1 %vm522_vm1, %v2885_v39  ;;  %v2875_v54 = vld [vmem:[%s3694_s12 + $0x5c] sm:$0xf]  ;;  %v2886_v57 = vcombine.low %v488_v40, %v489_v46  ;;  %v2882_v60 = vld [vmem:[%s3694_s12 + $0x78] sm:$0xf]  ;;  %v477_v62 = vmax.bf16 %v2867_v52, %v442_v50  ;;  %v2912_v26 = vcombine.low %v439_v32, %v440_v33  ;;  %v2922_v6 = vcombine.low %v3707_v8, %v3710_v9  ;;  %v1558_v31 = vld [vmem:[%s4370_s6 + $0x14] sm:$0xf] }
  0x2e   : > { %v490_v58 = vmax.bf16 %v482_v47, %v474_v44  ;;  %v491_v59 = vmax.bf16 %v483_v48, %v475_v45  ;;  %v2883_v61 = vld [vmem:[%s3694_s12 + $0x7c] sm:$0xf]  ;;  %v484_v63 = vmax.bf16 %v2882_v60, %v2874_v53  ;;  %v2923_v7 = vcombine.low %v3739_v20, %v3742_v21  ;;  %v3886_v43 = vld [vmem:[%s4370_s6 + $0xc] sm:$0xf] }
  0x2f   : > { %v485_v0 = vmax.bf16 %v2883_v61, %v2875_v54  ;;  %3122 = vmatmul.mubr.msk.bf16.vlgmr.msra.gmra.mrb[0].mxu1 %vm522_vm1, %v2886_v57  ;;  %v2951_v2 = vcombine.low %v2882_v60, %v2883_v61  ;;  %v2924_v16 = vcombine.low %v2864_v36, %v2865_v37  ;;  %v1044_v19 = vsel %vm535_vm0, %v1003_v27, 0  ;;  %v2963_v30 = vld [vmem:[%s363_s24 + $0x4] sm:$0xf] }
  0x30   : > { %v2887_v1 = vcombine.low %v490_v58, %v491_v59  ;;  %3130 = vmatpush3.bf16.msra.mxu1 %v3698_v5  ;;  %v492_v3 = vmax.bf16 %v484_v63, %v476_v55  ;;  %v2925_v8 = vcombine.low %v2866_v51, %v2867_v52  ;;  %v2935_v9 = vcombine.low %v3713_v10, %v3716_v11  ;;  %v1557_v10 = vld [vmem:[%s4370_s6 + $0x10] sm:$0xf]  ;;  %v1302_v11 = vld [vmem:[%s4368_s4] sm:$0x3] }
  0x31   : > { %v493_v12 = vmax.bf16 %v485_v0, %v477_v62  ;;  %3339 = vmatprep.subr.msk.bf16.mxu1 %vm535_vm0, %v3683_v4  ;;  %v2913_v4 = vcombine.low %v441_v49, %v442_v50  ;;  %v2936_v20 = vcombine.low %v3747_v23, %v3750_v24  ;;  %v2937_v21 = vcombine.low %v3773_v38, %v3776_v41  ;;  %v1301_v23 = vld [vmem:[%s363_s24] sm:$0xf] }
  0x32   : > { %3125 = vmatprep.mubr.msk.bf16.mxu1 %vm522_vm1, %v2887_v1  ;;  %v2938_v29 = vcombine.low %v2874_v53, %v2875_v54  ;;  %v3580_v13 = vmov 0.0   ;;  %3343 = vmatprep.subr.msk.bf16.mxu0 %vm1571_vm2, %v1557_v10  ;;  %v1314_v14 = vsel %vm535_vm0, %v1302_v11, 0  ;;  %v1376_v24 = vld [vmem:[%s4368_s4] sm:$0x3]  ;;  %v3582_v32 = vmov 0  }
  0x33   : > { %v2888_v15 = vcombine.low %v492_v3, %v493_v12  ;;  %v1388_v25 = vsel %vm535_vm0, %v1376_v24, 0  ;;  %718 = vst.msk [vmem:[#allocation2] sm:$0xff] %vm717_vm4, %v3582_v32  ;;  %719 = vst.msk [vmem:[#allocation2 + $0x28] sm:$0xff] %vm717_vm4, %v3582_v32  ;;  %v1573_v33 = vsel %vm1571_vm2, %v1558_v31, 0  ;;  %v1444_v34 = vlaneseq  ;;  %v2884_v24 = vld [vmem:[%s4367_s3] ss:$0 sm:$0xff] }
  0x34   : > { %720 = vst.msk [vmem:[#allocation2 + $0x50] sm:$0xff] %vm717_vm4, %v3582_v32  ;;  %v1370_v48 = vrot.slane %v3582_v32, 4 }
  0x36   : > { %1443 = vst.msk [vmem:[#allocation2 + $0x50] sm:$0xf0] %vm1372_vm7, %v1370_v48  ;;  %1373 = vst.msk [vmem:[#allocation2 + $0x28] sm:$0xf0] %vm1372_vm7, %v1370_v48 }
  0x37   : > { %3126 = vmatmul.mubr.msk.bf16.gmra.mrb[4].mxu1 %vm522_vm1, %v2888_v15 }
  0x38   : > { %3131 = vmatprep.mubr.msk.bf16.mxu1 %vm522_vm1, %v2910_v17 }
  0x3f   : > { %3132 = vmatmul.mubr.msk.bf16.vlgmr.msra.gmra.mrb[8].mxu1 %vm522_vm1, %v2911_v18 }
  0x40   : > { %3140 = vmatpush3.bf16.msra.mxu1 %v3698_v5  ;;  %3135 = vmatprep.mubr.msk.bf16.mxu1 %vm522_vm1, %v2912_v26  ;;  %v1152_v5 = vld [vmem:[%s4368_s4] sm:$0x3] }
  0x41   : > { %3340 = vmatprep.subr.msk.bf16.mxu1 %vm535_vm0, %v1003_v27  ;;  %v1193_v28 = vsel %vm535_vm0, %v1152_v5, 0 }
  0x47   : > { %3136 = vmatmul.mubr.msk.bf16.gmra.mrb[12].mxu1 %vm522_vm1, %v2913_v4 }
  0x48   : > { %3141 = vmatprep.mubr.msk.bf16.mxu1 %vm522_vm1, %v2922_v6 }
  0x4f   : > { %3142 = vmatmul.mubr.msk.bf16.vlgmr.msra.gmra.mrb[16].mxu1 %vm522_vm1, %v2923_v7 }
  0x50   : > { %3145 = vmatprep.mubr.msk.bf16.mxu1 %vm522_vm1, %v2924_v16  ;;  %3150 = vmatpush3.bf16.msra.mxu1 %v1044_v19 }
  0x51   : > { %3341 = vmatprep.subr.msk.bf16.mxu1 %vm535_vm0, %v1152_v5 }
  0x57   : > { %3146 = vmatmul.mubr.msk.bf16.gmra.mrb[20].mxu1 %vm522_vm1, %v2925_v8 }
  0x58   : > { %3151 = vmatprep.mubr.msk.bf16.mxu1 %vm522_vm1, %v2935_v9 }
  0x5f   : > { %3152 = vmatmul.mubr.msk.bf16.vlgmr.msra.gmra.mrb[24].mxu1 %vm522_vm1, %v2936_v20 }
  0x60   : > { %3155 = vmatprep.mubr.msk.bf16.mxu1 %vm522_vm1, %v2937_v21  ;;  %3160 = vmatpush3.bf16.msra.mxu1 %v1193_v28 }
  0x61   : > { %3169 = vmatprep.subr.bf16.mxu1 %v3580_v13 }
  0x67   : > { %3156 = vmatmul.mubr.msk.bf16.gmra.mrb[28].mxu1 %vm522_vm1, %v2938_v29 }
  0x68   : > { %3161 = vmatprep.mubr.msk.bf16.mxu1 %vm522_vm1, %v2948_v22  ;;  %v3861_v22 = vsel %vm1571_vm2, %v1557_v10, 0 }
  0x69   : > { %3192 = vmatpush3.bf16.msra.mxu0 %v3861_v22 }
  0x6a   : > { %3345 = vmatprep.subr.msk.bf16.mxu0 %vm1571_vm2, %v3886_v43 }
  0x6f   : > { %3162 = vmatmul.mubr.msk.bf16.vlgmr.msra.gmra.mrb[32].mxu1 %vm522_vm1, %v2949_v35  ;;  %v1445_v35 = vshrl.u32 %v1444_v34, 7 }
  0x70   : > { %3165 = vmatprep.mubr.msk.bf16.mxu1 %vm522_vm1, %v2950_v56  ;;  %3170 = vmatpush3.bf16.msra.mxu1 %v1314_v14 }
  0x71   : > { %3175 = vmatprep.subr.bf16.mxu1 %v3580_v13  ;;  %v1447_v36 = vadd.s32 16, %v1445_v35  ;;  %v1448_v37 = vadd.s32 24, %v1445_v35  ;;  %v1449_v38 = vadd.s32 32, %v1445_v35  ;;  %v1450_v40 = vadd.s32 40, %v1445_v35 }
  0x72   : > { %v1446_v41 = vadd.s32 8, %v1445_v35  ;;  %v1457_v42 = vand.u32 7, %v1445_v35  ;;  %v1451_v52 = vadd.s32 48, %v1445_v35  ;;  %v1452_v53 = vadd.s32 56, %v1445_v35 }
  0x73   : > { %v1471_v39 = vand.u32 7, %v1447_v36  ;;  %v1478_v44 = vand.u32 7, %v1448_v37  ;;  %v1485_v45 = vand.u32 7, %v1449_v38  ;;  %v1492_v47 = vand.u32 7, %v1450_v40 }
  0x74   : > { %v1464_v49 = vand.u32 7, %v1446_v41  ;;  %vm3895_vm6 = vcmp.ne.s32.totalorder %v1457_v42, 0  ;;  %v1499_v54 = vand.u32 7, %v1451_v52  ;;  %v1506_v55 = vand.u32 7, %v1452_v53 }
  0x75   : > { %vm3890_vm5 = vcmp.ne.s32.totalorder %v1471_v39, 0  ;;  %vm3899_vm8 = vcmp.ne.s32.totalorder %v1478_v44, 0  ;;  %vm1553_vm10 = vcmp.ne.s32.totalorder %v1485_v45, 0  ;;  %vm1741_vm11 = vmpackc.low %vm3895_vm6, %vm3895_vm6  ;;  %vm1554_vm12 = vcmp.ne.s32.totalorder %v1492_v47, 0 }
  0x76   : > { %vm1743_vm9 = vmpackc.low %vm3890_vm5, %vm3890_vm5  ;;  %vm1550_vm13 = vcmp.ne.s32.totalorder %v1464_v49, 0  ;;  %v1749_v60 = vsel %vm1741_vm11, 65537, %v3582_v32  ;;  %vm1556_vm5 = vcmp.ne.s32.totalorder %v1506_v55, 0 }
  0x77   : > { %3166 = vmatmul.mubr.msk.bf16.gmra.mrb[36].mxu1 %vm522_vm1, %v2951_v2  ;;  %vm1744_vm14 = vmpackc.low %vm3899_vm8, %vm3899_vm8  ;;  %v1751_v56 = vsel %vm1743_vm9, 65537, %v3582_v32  ;;  %vm2465_vm8 = vsmask.f32 3328  ;;  %vm1769_vm9 = vsmask.f32 7424 }
  0x78   : > { %3171 = vmatprep.mubr.msk.bf16.mxu1 %vm3581_vm3, %v3580_v13  ;;  %vm1745_vm15 = vmpackc.low %vm1553_vm10, %vm1553_vm10  ;;  %v1752_v57 = vsel %vm1744_vm14, 65537, %v3582_v32 }
  0x79   : > { %vm1746_vm0 = vmpackc.low %vm1554_vm12, %vm1554_vm12  ;;  %v1753_v58 = vsel %vm1745_vm15, 65537, %v3582_v32  ;;  %v3918_v62 = vcombine.low %v1751_v56, %v1752_v57 }
  0x7a   : > { %v1754_v59 = vsel %vm1746_vm0, 65537, %v3582_v32  ;;  %vm1748_vm7 = vmpackc.low %vm1556_vm5, %vm1556_vm5 }
  0x7b   : > { %v3920_v63 = vcombine.low %v1753_v58, %v1754_v59  ;;  %v1778_v1 = vshll.u32 %v3918_v62, 16  ;;  %v1782_v2 = vshrl.u32 %v3918_v62, 16  ;;  %v1756_v26 = vsel %vm1748_vm7, 65537, %v3582_v32  ;;  %v3994_v58 = vld [vmem:[%s4369_s5] ss:$0 sm:$0xff] }
  0x7c   : > { %vm2492_vm7 = vsmask.f32 4352 }
  0x7d   : > { %v1786_v3 = vshll.u32 %v3920_v63, 16  ;;  %v1790_v12 = vshrl.u32 %v3920_v63, 16  ;;  %v2469_v6 = vrot.slane %v1782_v2, 4  ;;  %v2470_v7 = vrot.slane %v1778_v1, 5 }
  0x7f   : > { %3172 = vmatmul.mubr.msk.bf16.vlgmr.msra.gmra.mrb[40].mxu1 %vm522_vm1, %v1301_v23  ;;  %v2474_v27 = vrot.slane %v1786_v3, 5  ;;  %v2473_v4 = vrot.slane %v1790_v12, 4  ;;  %v2471_v5 = vor.u32 %v2470_v7, %v2469_v6 }
  0x80   : > { %3177 = vmatprep.mubr.msk.bf16.mxu1 %vm3581_vm3, %v3580_v13  ;;  %3176 = vmatpush3.bf16.msra.mxu1 %v1388_v25  ;;  %vm1555_vm3 = vcmp.ne.s32.totalorder %v1499_v54, 0 }
  0x81   : > { %3342 = vmatprep.subr.msk.bf16.mxu1 %vm1571_vm2, %v1558_v31  ;;  %vm1747_vm6 = vmpackc.low %vm1555_vm3, %vm1555_vm3  ;;  %v2475_v8 = vor.u32 %v2474_v27, %v2473_v4 }
  0x82   : > { %v1755_v18 = vsel %vm1747_vm6, 65537, %v3582_v32 }
  0x83   : > { %v3944_v9 = vcombine.low %v1755_v18, %v1756_v26  ;;  %v3948_v21 = vsel %vm2465_vm8, %v2471_v5, %v2475_v8 }
  0x85   : > { %v1794_v29 = vshll.u32 %v3944_v9, 16 }
  0x87   : > { %3178 = vmatmul.mubr.msk.bf16.vlgmr.msra.gmra.mrb[44].mxu1 %vm522_vm1, %v2963_v30  ;;  %vm1742_vm1 = vmpackc.low %vm1550_vm13, %vm1550_vm13  ;;  %v2478_v13 = vrot.slane %v1794_v29, 5  ;;  %vm1812_vm13 = vsmask.f32 256 }
  0x88   : > { %3182 = vmatpush3.bf16.msra.mxu1 %v1573_v33  ;;  %v1750_v61 = vsel %vm1742_vm1, 65537, %v3582_v32  ;;  %vm2483_vm1 = vcmp.ne.s16.totalorder %v3948_v21, 0  ;;  %v2115_v21 = vld [vmem:[#allocation2 + $0x50] sm:$0x80] }
  0x89   : > { %3344 = vmatprep.subr.msk.bf16.mxu1 %vm1571_vm2, %v1557_v10  ;;  %v3922_v0 = vcombine.low %v1749_v60, %v1750_v61  ;;  %v1798_v10 = vshrl.u32 %v3944_v9, 16 }
  0x8b   : > { %v1771_v15 = vshll.u32 %v3922_v0, 16  ;;  %v1774_v17 = vshrl.u32 %v3922_v0, 16  ;;  %v2477_v11 = vrot.slane %v1798_v10, 4 }
  0x8d   : > { %v2467_v16 = vrot.slane %v1771_v15, 5  ;;  %v2466_v19 = vrot.slane %v1774_v17, 4  ;;  %v3959_v14 = vor.u32 %v2478_v13, %v2477_v11 }
  0x8f   : > { %v3946_v20 = vor.u32 %v2467_v16, %v2466_v19  ;;  %v3962_v23 = vsel %vm2465_vm8, %v2475_v8, %v3959_v14  ;;  %vm2485_vm5 = vcmp.ne.s16.totalorder %v3959_v14, 0 }
  0x90   : > { %vm2484_vm6 = vcmp.ne.s16.totalorder %v3962_v23, 0 }
  0x91   : > { %v3951_v28 = vsel %vm2465_vm8, %v3946_v20, %v2471_v5  ;;  %vm2481_vm0 = vcmp.ne.s16.totalorder %v3946_v20, 0  ;;  %vm708_vm8 = vcmask 126016  }
  0x92   : > { %vm2482_vm3 = vcmp.ne.s16.totalorder %v3951_v28, 0 }
 0x102   : > { %v3123_v25 = vpop.f32.mrb[0].mxu1 }
 0x103   : > { %v3967_v30 = vadd.f32 %v3123_v25, %v2884_v24  ;;  %v573_v31 = vpop.f32.mrb[1].mxu1 }
 0x104   : > { %v3969_v32 = vadd.f32 %v2884_v24, %v573_v31  ;;  %v3124_v33 = vpop.f32.mrb[2].mxu1 }
 0x105   : > { %v2895_v34 = vmul.f32 -1.442695, %v3967_v30  ;;  %v3972_v35 = vadd.f32 %v3124_v33, %v2884_v24  ;;  %v576_v36 = vpop.f32.mrb[3].mxu1 }
 0x106   : > { %v2893_v37 = vmul.f32 -1.442695, %v3969_v32  ;;  %v3975_v38 = vadd.f32 %v2884_v24, %v576_v36 }
 0x107   : > { %3412 = vpow2.f32 %v2895_v34  ;;  %v2896_v39 = vmul.f32 -1.442695, %v3972_v35 }
 0x108   : > { %3414 = vpow2.f32 %v2893_v37  ;;  %v2894_v40 = vmul.f32 -1.442695, %v3975_v38 }
 0x109   : > { %3416 = vpow2.f32 %v2896_v39 }
 0x10a   : > { %3418 = vpow2.f32 %v2894_v40  ;;  %v3127_v41 = vpop.f32.mrb[4].mxu1 }
 0x10b   : > { %v3979_v42 = vadd.f32 %v3127_v41, %v2884_v24  ;;  %v589_v44 = vpop.f32.mrb[5].mxu1 }
 0x10c   : > { %v3981_v45 = vadd.f32 %v2884_v24, %v589_v44  ;;  %v3128_v46 = vpop.f32.mrb[6].mxu1 }
 0x10d   : > { %v2899_v47 = vmul.f32 -1.442695, %v3979_v42  ;;  %v3984_v48 = vadd.f32 %v3128_v46, %v2884_v24  ;;  %v592_v49 = vpop.f32.mrb[7].mxu1 }
 0x10e   : > { %v2897_v50 = vmul.f32 -1.442695, %v3981_v45  ;;  %v3987_v51 = vadd.f32 %v2884_v24, %v592_v49 }
 0x10f   : > { %3420 = vpow2.f32 %v2899_v47  ;;  %v2900_v52 = vmul.f32 -1.442695, %v3984_v48 }
 0x110   : > { %3422 = vpow2.f32 %v2897_v50  ;;  %v2898_v53 = vmul.f32 -1.442695, %v3987_v51 }
 0x111   : > { %v3413_v54 = vpop.eup %3412  ;;  %3424 = vpow2.f32 %v2900_v52 }
 0x112   : > { %v3415_v55 = vpop.eup %3414  ;;  %v630_v56 = vadd.f32 1.0, %v3413_v54  ;;  %3426 = vpow2.f32 %v2898_v53  ;;  %v3133_v57 = vpop.f32.mrb[8].mxu1 }
 0x113   : > { %v3417_v59 = vpop.eup %3416  ;;  %v628_v60 = vadd.f32 1.0, %v3415_v55  ;;  %v799_v61 = vpop.f32.mrb[9].mxu1  ;;  %v808_v6 = vadd.f32 %v3133_v57, %v3994_v58 }
 0x114   : > { %v3419_v18 = vpop.eup %3418  ;;  %3428 = vrcp.f32 %v630_v56  ;;  %v631_v26 = vadd.f32 1.0, %v3417_v59  ;;  %v3134_v27 = vpop.f32.mrb[10].mxu1  ;;  %v800_v19 = vadd.f32 %v3994_v58, %v799_v61 }
 0x115   : > { %3430 = vrcp.f32 %v628_v60  ;;  %v629_v4 = vadd.f32 1.0, %v3419_v18  ;;  %v811_v7 = vadd.f32 %v3134_v27, %v3994_v58  ;;  %v802_v16 = vpop.f32.mrb[11].mxu1 }
 0x116   : > { %3432 = vrcp.f32 %v631_v26  ;;  %v803_v5 = vadd.f32 %v3994_v58, %v802_v16 }
 0x117   : > { %3434 = vrcp.f32 %v629_v4  ;;  %v4000_v8 = vpack.c.bf16 %v811_v7, %v808_v6 }
 0x118   : > { %v4002_v11 = vpack.c.bf16 %v803_v5, %v800_v19 }
 0x119   : > { %v3421_v13 = vpop.eup %3420  ;;  %v2919_v24 = vmul.bf16 3216621497, %v4000_v8 }
 0x11a   : > { %v3423_v25 = vpop.eup %3422  ;;  %v634_v31 = vadd.f32 1.0, %v3421_v13  ;;  %v3137_v33 = vpop.f32.mrb[12].mxu1  ;;  %v2918_v41 = vmul.bf16 3216621497, %v4002_v11 }
 0x11b   : > { %v3425_v34 = vpop.eup %3424  ;;  %v632_v36 = vadd.f32 1.0, %v3423_v25  ;;  %3436 = vpow.bf16 %v2919_v24  ;;  %v815_v37 = vpop.f32.mrb[13].mxu1  ;;  %v824_v47 = vadd.f32 %v3137_v33, %v3994_v58 }
 0x11c   : > { %v3427_v39 = vpop.eup %3426  ;;  %3438 = vrcp.f32 %v634_v31  ;;  %v635_v40 = vadd.f32 1.0, %v3425_v34  ;;  %v3138_v44 = vpop.f32.mrb[14].mxu1  ;;  %v816_v53 = vadd.f32 %v3994_v58, %v815_v37 }
 0x11d   : > { %3440 = vrcp.f32 %v632_v36  ;;  %v633_v46 = vadd.f32 1.0, %v3427_v39  ;;  %v827_v49 = vadd.f32 %v3138_v44, %v3994_v58  ;;  %v818_v50 = vpop.f32.mrb[15].mxu1 }
 0x11e   : > { %v3429_v52 = vpop.eup %3428  ;;  %3442 = vrcp.f32 %v635_v40  ;;  %v819_v54 = vadd.f32 %v3994_v58, %v818_v50 }
 0x11f   : > { %v3431_v55 = vpop.eup %3430  ;;  %3444 = vrcp.f32 %v633_v46  ;;  %v4010_v56 = vpack.c.bf16 %v827_v49, %v824_v47  ;;  %v654_v57 = vmul.f32 %v3429_v52, %v3967_v30 }
 0x120   : > { %v3433_v59 = vpop.eup %3432  ;;  %3446 = vpow.bf16 %v2918_v41  ;;  %v4013_v60 = vpack.c.bf16 %v819_v54, %v816_v53  ;;  %v652_v61 = vmul.f32 %v3431_v55, %v3969_v32 }
 0x121   : > { %v3435_v18 = vpop.eup %3434  ;;  %v655_v26 = vmul.f32 %v3433_v59, %v3972_v35  ;;  %v3031_v27 = vpack.c.bf16 %v654_v57, %v654_v57 }
 0x122   : > { %v653_v4 = vmul.f32 %v3435_v18, %v3975_v38  ;;  %v3143_v6 = vpop.f32.mrb[16].mxu1  ;;  %v3029_v7 = vpack.c.bf16 %v652_v61, %v652_v61  ;;  %v2920_v46 = vmul.bf16 3216621497, %v4013_v60 }
 0x123   : > { %688 = vrot.lane.b32.xlu1 %v3031_v27, %s3583_s19  ;;  %v932_v16 = vpop.f32.mrb[17].mxu1  ;;  %v3032_v30 = vpack.c.bf16 %v655_v26, %v655_v26  ;;  %v941_v5 = vadd.f32 %v3143_v6, %v3994_v58 }
 0x124   : > { %v3144_v19 = vpop.f32.mrb[18].mxu1  ;;  %684 = vrot.lane.b32.xlu0 %v3029_v7, %s3583_s19  ;;  %v3030_v25 = vpack.c.bf16 %v653_v4, %v653_v4  ;;  %v933_v38 = vadd.f32 %v3994_v58, %v932_v16 }
 0x125   : > { %v944_v32 = vadd.f32 %v3144_v19, %v3994_v58  ;;  %v935_v13 = vpop.f32.mrb[19].mxu1  ;;  %v2921_v19 = vmul.bf16 3216621497, %v4010_v56 }
 0x126   : > { %v3437_v24 = vpop.eup %3436  ;;  %v936_v31 = vadd.f32 %v3994_v58, %v935_v13 }
 0x127   : > { %v3439_v35 = vpop.eup %3438  ;;  %v851_v34 = vadd.bf16 1065369472, %v3437_v24  ;;  %v4024_v36 = vpack.c.bf16 %v944_v32, %v941_v5  ;;  %690 = vrot.lane.b32.xlu1 %v3032_v30, %s3583_s19 }
 0x128   : > { %v3441_v33 = vpop.eup %3440  ;;  %v4028_v40 = vpack.c.bf16 %v936_v31, %v933_v38  ;;  %686 = vrot.lane.b32.xlu0 %v3030_v25, %s3583_s19  ;;  %v658_v44 = vmul.f32 %v3439_v35, %v3979_v42 }
 0x129   : > { %v3443_v37 = vpop.eup %3442  ;;  %v656_v39 = vmul.f32 %v3441_v33, %v3981_v45  ;;  %v2931_v47 = vmul.bf16 3216621497, %v4024_v36  ;;  %3448 = vrcp.bf16 %v851_v34 }
 0x12a   : > { %v3445_v41 = vpop.eup %3444  ;;  %v2930_v52 = vmul.bf16 3216621497, %v4028_v40  ;;  %v3147_v53 = vpop.f32.mrb[20].mxu1  ;;  %v659_v55 = vmul.f32 %v3443_v37, %v3984_v48  ;;  %v3035_v26 = vpack.c.bf16 %v658_v44, %v658_v44 }
 0x12b   : > { %v3033_v49 = vpack.c.bf16 %v656_v39, %v656_v39  ;;  %v657_v50 = vmul.f32 %v3445_v41, %v3987_v51  ;;  %v3447_v54 = vpop.eup %3446  ;;  %3450 = vpow.bf16 %v2931_v47  ;;  %v948_v45 = vpop.f32.mrb[21].mxu1  ;;  %v957_v61 = vadd.f32 %v3147_v53, %v3994_v58 }
 0x12c   : > { %3452 = vpow.bf16 %v2930_v52  ;;  %v3148_v59 = vpop.f32.mrb[22].mxu1  ;;  %v850_v42 = vadd.bf16 1065369472, %v3447_v54  ;;  %v949_v27 = vadd.f32 %v3994_v58, %v948_v45  ;;  %v3036_v6 = vpack.c.bf16 %v659_v55, %v659_v55 }
 0x12d   : > { %v3034_v57 = vpack.c.bf16 %v657_v50, %v657_v50  ;;  %692 = vrot.lane.b32.xlu0 %v3033_v49, %s3583_s19  ;;  %3454 = vpow.bf16 %v2920_v46  ;;  %v960_v51 = vadd.f32 %v3148_v59, %v3994_v58  ;;  %v951_v18 = vpop.f32.mrb[23].mxu1 }
 0x12e   : > { %v952_v4 = vadd.f32 %v3994_v58, %v951_v18  ;;  %3456 = vrcp.bf16 %v850_v42 }
 0x12f   : > { %694 = vrot.lane.b32.xlu1 %v3034_v57, %s3583_s19  ;;  %v4043_v48 = vpack.c.bf16 %v960_v51, %v957_v61 }
 0x130   : > { %v4045_v7 = vpack.c.bf16 %v952_v4, %v949_v27  ;;  %v1862_v4 = vsel %vm1571_vm2, %v3886_v43, 0 }
 0x131   : > { %696 = vrot.lane.b32.xlu0 %v3035_v26, %s3583_s19  ;;  %v2933_v16 = vmul.bf16 3216621497, %v4043_v48 }
 0x132   : > { %v2932_v30 = vmul.bf16 3216621497, %v4045_v7  ;;  %v3153_v5 = vpop.f32.mrb[24].mxu1 }
 0x133   : > { %698 = vrot.lane.b32.xlu1 %v3036_v6, %s3583_s19  ;;  %3458 = vpow.bf16 %v2933_v16  ;;  %v1089_v32 = vadd.f32 %v3153_v5, %v3994_v58  ;;  %v1080_v13 = vpop.f32.mrb[25].mxu1 }
 0x134   : > { %3460 = vpow.bf16 %v2932_v30  ;;  %v1081_v24 = vadd.f32 %v3994_v58, %v1080_v13  ;;  %v3154_v35 = vpop.f32.mrb[26].mxu1  ;;  %v3449_v25 = vpop.eup %3448 }
 0x135   : > { %v1092_v38 = vadd.f32 %v3154_v35, %v3994_v58  ;;  %v1083_v31 = vpop.f32.mrb[27].mxu1  ;;  %3462 = vpow.bf16 %v2921_v19  ;;  %v857_v50 = vmul.bf16 1065369472, %v3449_v25 }
 0x136   : > { %v3451_v33 = vpop.eup %3450  ;;  %v1084_v34 = vadd.f32 %v3994_v58, %v1083_v31 }
 0x137   : > { %v3453_v37 = vpop.eup %3452  ;;  %v984_v39 = vadd.bf16 1065369472, %v3451_v33  ;;  %v4056_v41 = vpack.c.bf16 %v1092_v38, %v1089_v32  ;;  %v863_v18 = vmul.bf16 %v857_v50, %v4000_v8  ;;  %v1780_v38 = vrot.slane %v1778_v1, 1 }
 0x138   : > { %v3455_v44 = vpop.eup %3454  ;;  %v983_v46 = vadd.bf16 1065369472, %v3453_v37  ;;  %v4058_v47 = vpack.c.bf16 %v1084_v34, %v1081_v24  ;;  %v4084_v24 = vrot.slane %v1771_v15, 1 }
 0x139   : > { %v3457_v49 = vpop.eup %3456  ;;  %3464 = vrcp.bf16 %v984_v39  ;;  %v2944_v52 = vmul.bf16 3216621497, %v4056_v41  ;;  %v852_v55 = vadd.bf16 1065369472, %v3455_v44 }
 0x13a   : > { %3466 = vrcp.bf16 %v983_v46  ;;  %v2943_v53 = vmul.bf16 3216621497, %v4058_v47  ;;  %v3157_v54 = vpop.f32.mrb[28].mxu1  ;;  %v855_v45 = vmul.bf16 1065369472, %v3457_v49  ;;  %v1776_v1 = vor.u32 %v1774_v17, %v4084_v24 }
 0x13b   : > { %3468 = vpow.bf16 %v2944_v52  ;;  %v1105_v57 = vadd.f32 %v3157_v54, %v3994_v58  ;;  %v1096_v59 = vpop.f32.mrb[29].mxu1  ;;  %vm1801_vm10 = vcmp.ne.s16.totalorder %v4084_v24, 0 }
 0x13c   : > { %3470 = vpow.bf16 %v2943_v53  ;;  %v862_v42 = vmul.bf16 %v855_v45, %v4002_v11  ;;  %v1097_v61 = vadd.f32 %v3994_v58, %v1096_v59  ;;  %v3158_v51 = vpop.f32.mrb[30].mxu1  ;;  %v4074_v11 = vld [vmem:[%s4370_s6 + $0x1c] sm:$0xf]  ;;  %v1784_v45 = vor.u32 %v1782_v2, %v1780_v38 }
 0x13d   : > { %v1108_v26 = vadd.f32 %v3158_v51, %v3994_v58  ;;  %v1099_v27 = vpop.f32.mrb[31].mxu1  ;;  %3472 = vrcp.bf16 %v852_v55  ;;  %v1788_v55 = vrot.slane %v1786_v3, 1 }
 0x13e   : > { %v3459_v6 = vpop.eup %3458  ;;  %3193 = vmatprep.mubr.msk.bf16.mxu0 %vm717_vm4, %v862_v42  ;;  %v1100_v16 = vadd.f32 %v3994_v58, %v1099_v27 }
 0x13f   : > { %v3461_v19 = vpop.eup %3460  ;;  %v986_v30 = vadd.bf16 1065369472, %v3459_v6  ;;  %3194 = vmatmul.mubr.msk.bf16.vlgmr.msra.gmra.mrb[0].mxu0 %vm717_vm4, %v863_v18  ;;  %v4077_v8 = vpack.c.bf16 %v1108_v26, %v1105_v57  ;;  %v1720_v18 = vld [vmem:[#allocation2] sm:$0x80]  ;;  %v4122_v6 = vsel %vm1769_vm9, %v1784_v45, %v1788_v55 }
 0x140   : > { %v985_v5 = vadd.bf16 1065369472, %v3461_v19  ;;  %v4079_v32 = vpack.c.bf16 %v1100_v16, %v1097_v61  ;;  %3202 = vmatpush3.bf16.msra.mxu0 %v1862_v4  ;;  %v3463_v43 = vpop.eup %3462  ;;  %v1806_v4 = vsel %vm1801_vm10, %v1720_v18, 0  ;;  %vm1803_vm12 = vcmp.ne.s16.totalorder %v4122_v6, 0 }
 0x141   : > { %3474 = vrcp.bf16 %v986_v30  ;;  %v2946_v13 = vmul.bf16 3216621497, %v4077_v8  ;;  %3346 = vmatprep.subr.msk.bf16.mxu0 %vm1571_vm2, %v4074_v11  ;;  %v853_v37 = vadd.bf16 1065369472, %v3463_v43 }
 0x142   : > { %3476 = vrcp.bf16 %v985_v5  ;;  %v2945_v35 = vmul.bf16 3216621497, %v4079_v32  ;;  %v3163_v25 = vpop.f32.mrb[32].mxu1  ;;  %v1796_v5 = vrot.slane %v1794_v29, 1 }
 0x143   : > { %3478 = vpow.bf16 %v2946_v13  ;;  %v1238_v31 = vadd.f32 %v3163_v25, %v3994_v58  ;;  %v1229_v33 = vpop.f32.mrb[33].mxu1 }
 0x144   : > { %v3465_v34 = vpop.eup %3464  ;;  %3480 = vpow.bf16 %v2945_v35  ;;  %v1230_v15 = vadd.f32 %v3994_v58, %v1229_v33  ;;  %v3164_v39 = vpop.f32.mrb[34].mxu1 }
 0x145   : > { %v3467_v44 = vpop.eup %3466  ;;  %v990_v46 = vmul.bf16 1065369472, %v3465_v34  ;;  %v1241_v49 = vadd.f32 %v3164_v39, %v3994_v58  ;;  %v1232_v50 = vpop.f32.mrb[35].mxu1  ;;  %3482 = vrcp.bf16 %v853_v37  ;;  %v1814_v37 = vshrl.u32 %v1806_v4, 16 }
 0x146   : > { %v3469_v52 = vpop.eup %3468  ;;  %v988_v53 = vmul.bf16 1065369472, %v3467_v44  ;;  %v1233_v54 = vadd.f32 %v3994_v58, %v1232_v50  ;;  %v1792_v44 = vor.u32 %v1790_v12, %v1788_v55 }
 0x147   : > { %v3471_v57 = vpop.eup %3470  ;;  %v996_v59 = vmul.bf16 %v990_v46, %v4024_v36  ;;  %v1132_v42 = vadd.bf16 1065369472, %v3469_v52  ;;  %v4103_v61 = vpack.c.bf16 %v1241_v49, %v1238_v31 }
 0x148   : > { %v995_v0 = vmul.bf16 %v988_v53, %v4028_v40  ;;  %v1131_v17 = vadd.bf16 1065369472, %v3471_v57  ;;  %v4107_v51 = vpack.c.bf16 %v1233_v54, %v1230_v15  ;;  %v3473_v2 = vpop.eup %3472  ;;  %v4115_v40 = vsel %vm1769_vm9, %v1776_v1, %v1780_v38 }
 0x149   : > { %1000 = vst.msk [vmem:[#allocation2 + $0x10] sm:$0xff] %vm717_vm4, %v996_v59  ;;  %3484 = vrcp.bf16 %v1132_v42  ;;  %v2957_v62 = vmul.bf16 3216621497, %v4103_v61  ;;  %v859_v13 = vmul.bf16 1065369472, %v3473_v2  ;;  %vm1802_vm11 = vcmp.ne.s16.totalorder %v4115_v40, 0 }
 0x14a   : > { %999 = vst.msk [vmem:[#allocation2 + $0x8] sm:$0xff] %vm717_vm4, %v995_v0  ;;  %3486 = vrcp.bf16 %v1131_v17  ;;  %v2956_v3 = vmul.bf16 3216621497, %v4107_v51  ;;  %v3167_v36 = vpop.f32.mrb[36].mxu1  ;;  %3183 = vmatprep.mubr.msk.bf16.mxu1 %vm717_vm4, %v995_v0  ;;  %v4157_v57 = vsel %vm1769_vm9, %v1792_v44, %v1796_v5  ;;  %v1816_v0 = vrot.slane %v1814_v37, 7 }
 0x14b   : > { %3488 = vpow.bf16 %v2957_v62  ;;  %v1254_v26 = vadd.f32 %v3167_v36, %v3994_v58  ;;  %v1245_v27 = vpop.f32.mrb[37].mxu1  ;;  %3184 = vmatmul.mubr.msk.bf16.vlgmr.msra.gmra.mrb[48].mxu1 %vm717_vm4, %v996_v59  ;;  %v864_v52 = vmul.bf16 %v859_v13, %v4013_v60  ;;  %vm1804_vm15 = vcmp.ne.s16.totalorder %v4157_v57, 0 }
 0x14c   : > { %v3475_v16 = vpop.eup %3474  ;;  %3490 = vpow.bf16 %v2956_v3  ;;  %v1246_v19 = vadd.f32 %v3994_v58, %v1245_v27  ;;  %v3168_v30 = vpop.f32.mrb[38].mxu1  ;;  %3272 = vmatpush3.bf16.msra.mxu1 %v3861_v22 }
 0x14d   : > { %v3477_v43 = vpop.eup %3476  ;;  %v994_v35 = vmul.bf16 1065369472, %v3475_v16  ;;  %v1257_v25 = vadd.f32 %v3168_v30, %v3994_v58  ;;  %v1248_v38 = vpop.f32.mrb[39].mxu1  ;;  %v1951_v30 = vsel %vm1571_vm2, %v4074_v11, 0 }
 0x14e   : > { %v3479_v31 = vpop.eup %3478  ;;  %v992_v33 = vmul.bf16 1065369472, %v3477_v43  ;;  %v1249_v34 = vadd.f32 %v3994_v58, %v1248_v38  ;;  %v4142_v58 = vor.u32 %v1798_v10, %v1796_v5  ;;  %v2026_v38 = vld [vmem:[%s4370_s6 + $0x20] sm:$0xf] }
 0x14f   : > { %v3481_v15 = vpop.eup %3480  ;;  %v998_v22 = vmul.bf16 %v994_v35, %v4043_v48  ;;  %v1134_v39 = vadd.bf16 1065369472, %v3479_v31  ;;  %v4133_v29 = vpack.c.bf16 %v1257_v25, %v1254_v26 }
 0x150   : > { %v997_v46 = vmul.bf16 %v992_v33, %v4045_v7  ;;  %v1133_v49 = vadd.bf16 1065369472, %v3481_v15  ;;  %v4138_v50 = vpack.c.bf16 %v1249_v34, %v1246_v19  ;;  %v1722_v1 = vld [vmem:[#allocation2 + $0x10] sm:$0xff]  ;;  %v3483_v60 = vpop.eup %3482  ;;  %vm1805_vm14 = vcmp.ne.s16.totalorder %v4142_v58, 0 }
 0x151   : > { %1002 = vst.msk [vmem:[#allocation2 + $0x20] sm:$0xff] %vm717_vm4, %v998_v22  ;;  %3492 = vrcp.bf16 %v1134_v39  ;;  %v2959_v48 = vmul.bf16 3216621497, %v4133_v29  ;;  %v1721_v53 = vld [vmem:[#allocation2 + $0x8] sm:$0xff]  ;;  %v1808_v63 = vsel %vm1803_vm12, %v1722_v1, 0 }
 0x152   : > { %1001 = vst.msk [vmem:[#allocation2 + $0x18] sm:$0xff] %vm717_vm4, %v997_v46  ;;  %3494 = vrcp.bf16 %v1133_v49  ;;  %v2958_v12 = vmul.bf16 3216621497, %v4138_v50  ;;  %3187 = vmatprep.mubr.msk.bf16.mxu1 %vm717_vm4, %v997_v46  ;;  %v1807_v9 = vsel %vm1802_vm11, %v1721_v53, 0  ;;  %v1826_v10 = vshrl.u32 %v1808_v63, 16 }
 0x153   : > { %3496 = vpow.bf16 %v2959_v48  ;;  %3188 = vmatmul.mubr.msk.bf16.gmra.mrb[52].mxu1 %vm717_vm4, %v998_v22  ;;  %v1818_v7 = vshrl.u32 %v1807_v9, 16  ;;  %v1829_v55 = vshll.u32 %v1808_v63, 16  ;;  %v1821_v18 = vshll.u32 %v1807_v9, 16 }
 0x154   : > { %v3485_v54 = vpop.eup %3484  ;;  %3498 = vpow.bf16 %v2958_v12  ;;  %3197 = vmatprep.mubr.msk.bf16.mxu1 %vm717_vm4, %v864_v52  ;;  %v1828_v45 = vrot.slane %v1826_v10, 7  ;;  %v861_v43 = vmul.bf16 1065369472, %v3483_v60 }
 0x155   : > { %v3487_v59 = vpop.eup %3486  ;;  %v1138_v42 = vmul.bf16 1065369472, %v3485_v54  ;;  %v1820_v17 = vrot.slane %v1818_v7, 7 }
 0x156   : > { %v3489_v62 = vpop.eup %3488  ;;  %v1136_v2 = vmul.bf16 1065369472, %v3487_v59  ;;  %v1831_v3 = vor.u32 %v1829_v55, %v1828_v45  ;;  %v865_v22 = vmul.bf16 %v861_v43, %v4010_v56 }
 0x157   : > { %v3491_v36 = vpop.eup %3490  ;;  %v1144_v26 = vmul.bf16 %v1138_v42, %v4056_v41  ;;  %v1281_v27 = vadd.bf16 1065369472, %v3489_v62  ;;  %v1823_v4 = vor.u32 %v1821_v18, %v1820_v17  ;;  %v2125_v42 = vld [vmem:[%s4370_s6 + $0x18] sm:$0xf] }
 0x158   : > { %v1143_v16 = vmul.bf16 %v1136_v2, %v4058_v47  ;;  %v1280_v19 = vadd.bf16 1065369472, %v3491_v36  ;;  %v1724_v5 = vld [vmem:[#allocation2 + $0x20] sm:$0xff]  ;;  %v1832_v47 = vsel %vm1812_vm13, %v1820_v17, %v1831_v3 }
 0x159   : > { %1149 = vst.msk [vmem:[#allocation2 + $0x38] sm:$0xff] %vm717_vm4, %v1144_v26  ;;  %3500 = vrcp.bf16 %v1281_v27  ;;  %v1824_v13 = vsel %vm1812_vm13, %v1816_v0, %v1823_v4  ;;  %v1723_v35 = vld [vmem:[#allocation2 + $0x18] sm:$0xff]  ;;  %v1810_v41 = vsel %vm1805_vm14, %v1724_v5, 0  ;;  %v2464_v0 = vld [vmem:[#allocation2 + $0x50] sm:$0xf8] }
 0x15a   : > { %1148 = vst.msk [vmem:[#allocation2 + $0x30] sm:$0xff] %vm717_vm4, %v1143_v16  ;;  %3502 = vrcp.bf16 %v1280_v19  ;;  %3203 = vmatprep.mubr.msk.bf16.mxu0 %vm717_vm4, %v1824_v13  ;;  %v1809_v11 = vsel %vm1804_vm15, %v1723_v35, 0  ;;  %v1842_v25 = vshrl.u32 %v1810_v41, 16  ;;  %v1845_v37 = vshll.u32 %v1810_v41, 16 }
 0x15b   : > { %3204 = vmatmul.mubr.msk.bf16.vlgmr.msra.gmra.mrb[0].mxu0 %vm717_vm4, %v1832_v47  ;;  %v1834_v31 = vshrl.u32 %v1809_v11, 16  ;;  %v1837_v46 = vshll.u32 %v1809_v11, 16  ;;  %v2486_v62 = vsel %vm2481_vm0, %v2464_v0, 0  ;;  %v2120_v13 = vsel %vm1801_vm10, %v2115_v21, 0 }
 0x15c   : > { %v3493_v33 = vpop.eup %3492  ;;  %3212 = vmatpush3.bf16.msra.mxu0 %v1951_v30  ;;  %v1844_v34 = vrot.slane %v1842_v25, 7  ;;  %v2497_v27 = vshll.u32 %v2486_v62, 16 }
 0x15d   : > { %v3495_v15 = vpop.eup %3494  ;;  %v1142_v39 = vmul.bf16 1065369472, %v3493_v33  ;;  %v1836_v44 = vrot.slane %v1834_v31, 7  ;;  %3347 = vmatprep.subr.msk.bf16.mxu0 %vm1571_vm2, %v2026_v38 }
 0x15e   : > { %v3497_v49 = vpop.eup %3496  ;;  %v1140_v1 = vmul.bf16 1065369472, %v3495_v15  ;;  %v1847_v52 = vor.u32 %v1845_v37, %v1844_v34  ;;  %v2499_v30 = vrot.slane %v2497_v27, 4  ;;  %v2127_v34 = vshrl.u32 %v2120_v13, 16  ;;  %v2255_v37 = vld [vmem:[%s4370_s6 + $0x4] sm:$0xf] }
 0x15f   : > { %v3499_v48 = vpop.eup %3498  ;;  %v1146_v53 = vmul.bf16 %v1142_v39, %v4077_v8  ;;  %v1283_v63 = vadd.bf16 1065369472, %v3497_v49  ;;  %3198 = vmatmul.mubr.msk.bf16.vlgmr.msra.gmra.mrb[52].mxu1 %vm717_vm4, %v865_v22  ;;  %v1839_v12 = vor.u32 %v1837_v46, %v1836_v44  ;;  %v2361_v27 = vld [vmem:[%s4370_s6 + $0x8] sm:$0xf] }
 0x160   : > { %v1145_v9 = vmul.bf16 %v1140_v1, %v4079_v32  ;;  %v1282_v10 = vadd.bf16 1065369472, %v3499_v48  ;;  %v1848_v60 = vsel %vm1812_vm13, %v1836_v44, %v1847_v52  ;;  %v2252_v13 = vld [vmem:[#allocation2 + $0x38] sm:$0xff] }
 0x161   : > { %1151 = vst.msk [vmem:[#allocation2 + $0x48] sm:$0xff] %vm717_vm4, %v1146_v53  ;;  %3504 = vrcp.bf16 %v1283_v63  ;;  %v1840_v56 = vsel %vm1812_vm13, %v1828_v45, %v1839_v12  ;;  %v2040_v45 = vsel %vm1571_vm2, %v2026_v38, 0  ;;  %v2175_v38 = vsel %vm1571_vm2, %v2125_v42, 0 }
 0x162   : > { %1150 = vst.msk [vmem:[#allocation2 + $0x40] sm:$0xff] %vm717_vm4, %v1145_v9  ;;  %3506 = vrcp.bf16 %v1282_v10  ;;  %3207 = vmatprep.mubr.msk.bf16.mxu0 %vm717_vm4, %v1840_v56  ;;  %v2129_v12 = vrot.slane %v2127_v34, 7 }
 0x163   : > { %3208 = vmatmul.mubr.msk.bf16.gmra.mrb[4].mxu0 %vm717_vm4, %v1848_v60 }
 0x164   : > { %v3501_v8 = vpop.eup %3500  ;;  %3213 = vmatprep.mubr.msk.bf16.mxu0 %vm717_vm4, %v1143_v16 }
 0x165   : > { %v3503_v7 = vpop.eup %3502  ;;  %v1287_v32 = vmul.bf16 1065369472, %v3501_v8 }
 0x166   : > { %v1285_v54 = vmul.bf16 1065369472, %v3503_v7 }
 0x167   : > { %v1293_v55 = vmul.bf16 %v1287_v32, %v4103_v61 }
 0x168   : > { %v1292_v59 = vmul.bf16 %v1285_v54, %v4107_v51 }
 0x169   : > { %1298 = vst.msk [vmem:[#allocation2 + $0x60] sm:$0xff] %vm717_vm4, %v1293_v55 }
 0x16a   : > { %1297 = vst.msk [vmem:[#allocation2 + $0x58] sm:$0xff] %vm717_vm4, %v1292_v59 }
 0x16b   : > { %3214 = vmatmul.mubr.msk.bf16.vlgmr.msra.gmra.mrb[0].mxu0 %vm717_vm4, %v1144_v26  ;;  %v2494_v26 = vshrl.u32 %v2486_v62, 16 }
 0x16c   : > { %v3505_v17 = vpop.eup %3504  ;;  %3222 = vmatpush3.bf16.msra.mxu0 %v2040_v45  ;;  %3217 = vmatprep.mubr.msk.bf16.mxu0 %vm717_vm4, %v1145_v9 }
 0x16d   : > { %v3507_v61 = vpop.eup %3506  ;;  %v1291_v51 = vmul.bf16 1065369472, %v3505_v17  ;;  %3348 = vmatprep.subr.msk.bf16.mxu0 %vm1571_vm2, %v2125_v42  ;;  %v2496_v19 = vrot.slane %v2494_v26, 3 }
 0x16e   : > { %v1289_v18 = vmul.bf16 1065369472, %v3507_v61 }
 0x16f   : > { %v4204_v2 = vmul.bf16 %v1291_v51, %v4133_v29  ;;  %v2500_v33 = vor.u32 %v2499_v30, %v2496_v19 }
 0x170   : > { %v1294_v3 = vmul.bf16 %v1289_v18, %v4138_v50  ;;  %v4207_v36 = vld [vmem:[#allocation2 + $0x60] sm:$0xff] }
 0x171   : > { %1300 = vst.msk [vmem:[#allocation2 + $0x70] sm:$0xff] %vm717_vm4, %v4204_v2  ;;  %v4212_v20 = vld [vmem:[#allocation2 + $0x58] sm:$0xff]  ;;  %v2488_v4 = vsel %vm2483_vm1, %v4207_v36, 0  ;;  %v2122_v24 = vsel %vm1803_vm12, %v4207_v36, 0 }
 0x172   : > { %1299 = vst.msk [vmem:[#allocation2 + $0x68] sm:$0xff] %vm717_vm4, %v1294_v3  ;;  %v2121_v29 = vsel %vm1802_vm11, %v4212_v20, 0  ;;  %v2487_v28 = vsel %vm2482_vm3, %v4212_v20, 0  ;;  %v2511_v50 = vshrl.u32 %v2488_v4, 16  ;;  %v2514_v43 = vshll.u32 %v2488_v4, 16 }
 0x173   : > { %3218 = vmatmul.mubr.msk.bf16.gmra.mrb[4].mxu0 %vm717_vm4, %v1146_v53  ;;  %v2502_v16 = vshrl.u32 %v2487_v28, 16  ;;  %v2505_v5 = vshll.u32 %v2487_v28, 16  ;;  %v2131_v35 = vshrl.u32 %v2121_v29, 16  ;;  %v2134_v44 = vshll.u32 %v2121_v29, 16  ;;  %v2250_v29 = vld [vmem:[#allocation2 + $0x28] sm:$0xf0] }
 0x174   : > { %3223 = vmatprep.mubr.msk.bf16.mxu0 %vm717_vm4, %v1292_v59  ;;  %v2513_v11 = vrot.slane %v2511_v50, 3  ;;  %v2516_v25 = vrot.slane %v2514_v43, 4  ;;  %v2139_v52 = vshrl.u32 %v2122_v24, 16  ;;  %v2142_v0 = vshll.u32 %v2122_v24, 16  ;;  %v2251_v28 = vld [vmem:[#allocation2 + $0x30] sm:$0xff] }
 0x175   : > { %v2504_v41 = vrot.slane %v2502_v16, 3  ;;  %v2507_v47 = vrot.slane %v2505_v5, 4  ;;  %v2133_v14 = vrot.slane %v2131_v35, 7  ;;  %v2262_v16 = vrot.slane %v2250_v29, 4  ;;  %v1350_v5 = vpop.f32.mrb[40].mxu1 }
 0x176   : > { %v2517_v39 = vor.u32 %v2516_v25, %v2513_v11  ;;  %v2141_v32 = vrot.slane %v2139_v52, 7  ;;  %v2263_v19 = vrot.slane %v2251_v28, 4  ;;  %v3173_v35 = vpop.f32.mrb[41].mxu1 }
 0x177   : > { %v2508_v22 = vor.u32 %v2507_v47, %v2504_v41  ;;  %v2136_v9 = vor.u32 %v2134_v44, %v2133_v14  ;;  %v2253_v41 = vld [vmem:[#allocation2 + $0x40] sm:$0xff]  ;;  %v1353_v47 = vpop.f32.mrb[42].mxu1 }
 0x178   : > { %v4224_v40 = vld [vmem:[#allocation2 + $0x70] sm:$0xf]  ;;  %v2144_v18 = vor.u32 %v2142_v0, %v2141_v32  ;;  %v2264_v43 = vsel %vm1571_vm2, %v2262_v16, %v2263_v19  ;;  %v3174_v25 = vpop.f32.mrb[43].mxu1  ;;  %v2267_v24 = vrot.slane %v2253_v41, 4 }
 0x179   : > { %v4228_v31 = vld [vmem:[#allocation2 + $0x68] sm:$0xff]  ;;  %v2490_v15 = vsel %vm2485_vm5, %v4224_v40, 0  ;;  %v4246_v46 = vsel %vm2492_vm7, %v2500_v33, %v2508_v22  ;;  %v4249_v49 = vsel %vm2492_vm7, %v2508_v22, %v2517_v39  ;;  %v2119_v56 = vld [vmem:[#allocation2 + $0x70] sm:$0xff]  ;;  %v2137_v59 = vsel %vm1812_vm13, %v2129_v12, %v2136_v9  ;;  %v2491_v22 = vld [vmem:[%s4370_s6] sm:$0xf] }
 0x17a   : > { %v2123_v23 = vsel %vm1804_vm15, %v4228_v31, 0  ;;  %v2489_v6 = vsel %vm2484_vm6, %v4228_v31, 0  ;;  %v2529_v53 = vshrl.u32 %v2490_v15, 16  ;;  %v2532_v63 = vshll.u32 %v2490_v15, 16 }
 0x17b   : > { %3224 = vmatmul.mubr.msk.bf16.vlgmr.msra.gmra.mrb[0].mxu0 %vm717_vm4, %v1293_v55  ;;  %v2520_v1 = vshrl.u32 %v2489_v6, 16  ;;  %v2523_v48 = vshll.u32 %v2489_v6, 16  ;;  %v2147_v57 = vshrl.u32 %v2123_v23, 16  ;;  %v2124_v42 = vsel %vm1805_vm14, %v2119_v56, 0  ;;  %v2254_v6 = vld [vmem:[#allocation2 + $0x48] sm:$0xf] }
 0x17c   : > { %3232 = vmatpush3.bf16.msra.mxu0 %v2175_v38  ;;  %3227 = vmatprep.mubr.msk.bf16.mxu0 %vm717_vm4, %v1294_v3  ;;  %v2531_v8 = vrot.slane %v2529_v53, 3  ;;  %v2534_v7 = vrot.slane %v2532_v63, 4  ;;  %v2150_v51 = vshll.u32 %v2123_v23, 16  ;;  %v2155_v62 = vshrl.u32 %v2124_v42, 16 }
 0x17d   : > { %3349 = vmatprep.subr.msk.bf16.mxu0 %vm1571_vm2, %v2255_v37  ;;  %v2522_v10 = vrot.slane %v2520_v1, 3  ;;  %v2525_v60 = vrot.slane %v2523_v48, 4  ;;  %v2149_v45 = vrot.slane %v2147_v57, 7  ;;  %v2145_v26 = vsel %vm1812_vm13, %v2133_v14, %v2144_v18  ;;  %v2359_v1 = vld [vmem:[#allocation2 + $0x50] sm:$0xf0] }
 0x17e   : > { %v2535_v55 = vor.u32 %v2534_v7, %v2531_v8  ;;  %v2157_v58 = vrot.slane %v2155_v62, 7  ;;  %v2158_v21 = vshll.u32 %v2124_v42, 16  ;;  %v2265_v33 = vrot.slane %v2252_v13, 4 }
 0x17f   : > { %v2526_v54 = vor.u32 %v2525_v60, %v2522_v10  ;;  %v2152_v3 = vor.u32 %v2150_v51, %v2149_v45  ;;  %v2269_v63 = vrot.slane %v2254_v6, 4  ;;  %v2367_v12 = vrot.slane %v2359_v1, 4 }
 0x180   : > { %v2160_v50 = vor.u32 %v2158_v21, %v2157_v58  ;;  %v2266_v15 = vsel %vm1571_vm2, %v2263_v19, %v2265_v33  ;;  %v2268_v23 = vsel %vm1571_vm2, %v2265_v33, %v2267_v24  ;;  %v2368_v9 = vrot.slane %v4212_v20, 4 }
 0x181   : > { %v4258_v17 = vsel %vm2492_vm7, %v2517_v39, %v2526_v54  ;;  %v4261_v61 = vsel %vm2492_vm7, %v2526_v54, %v2535_v55  ;;  %v2153_v4 = vsel %vm1812_vm13, %v2141_v32, %v2152_v3  ;;  %v1424_v39 = vpop.f32.mrb[44].mxu1  ;;  %v2270_v56 = vsel %vm1571_vm2, %v2267_v24, %v2269_v63 }
 0x182   : > { %v2161_v30 = vsel %vm1812_vm13, %v2149_v45, %v2160_v50  ;;  %v3179_v44 = vpop.f32.mrb[45].mxu1  ;;  %v2369_v60 = vsel %vm1571_vm2, %v2367_v12, %v2368_v9  ;;  %v2370_v7 = vrot.slane %v4207_v36, 4  ;;  %v2372_v20 = vrot.slane %v4228_v31, 4 }
 0x183   : > { %3228 = vmatmul.mubr.msk.bf16.gmra.mrb[4].mxu0 %vm717_vm4, %v4204_v2  ;;  %v2284_v2 = vsel %vm1571_vm2, %v2255_v37, 0  ;;  %v2389_v37 = vsel %vm1571_vm2, %v2361_v27, 0  ;;  %v1427_v52 = vpop.f32.mrb[46].mxu1  ;;  %v2550_v32 = vsel %vm1571_vm2, %v2491_v22, 0 }
 0x184   : > { %3233 = vmatprep.mubr.msk.bf16.mxu0 %vm717_vm4, %v2137_v59  ;;  %v3180_v48 = vpop.f32.mrb[47].mxu1  ;;  %v2371_v54 = vsel %vm1571_vm2, %v2368_v9, %v2370_v7  ;;  %v2373_v55 = vsel %vm1571_vm2, %v2370_v7, %v2372_v20  ;;  %v2374_v59 = vrot.slane %v4224_v40, 4 }
 0x186   : > { %v2375_v45 = vsel %vm1571_vm2, %v2372_v20, %v2374_v59 }
 0x18b   : > { %3234 = vmatmul.mubr.msk.bf16.vlgmr.msra.gmra.mrb[0].mxu0 %vm717_vm4, %v2145_v26 }
 0x18c   : > { %3242 = vmatpush3.bf16.msra.mxu0 %v2284_v2  ;;  %3237 = vmatprep.mubr.msk.bf16.mxu0 %vm717_vm4, %v2153_v4 }
 0x18d   : > { %3350 = vmatprep.subr.msk.bf16.mxu0 %vm1571_vm2, %v2361_v27 }
 0x193   : > { %3238 = vmatmul.mubr.msk.bf16.gmra.mrb[4].mxu0 %vm717_vm4, %v2161_v30 }
 0x194   : > { %3243 = vmatprep.mubr.msk.bf16.mxu0 %vm717_vm4, %v2264_v43 }
 0x195   : > { %v689_v11 = vpop.permute.xlu1 %688 }
 0x196   : > { %711 = vst.msk [vmem:[%s4279_s17 + $0x8] sm:$0xf] %vm708_vm8, %v689_v11  ;;  %v685_v38 = vpop.permute.xlu0 %684 }
 0x197   : > { %709 = vst.msk [vmem:[%s4279_s17] sm:$0xf] %vm708_vm8, %v685_v38 }
 0x199   : > { %v691_v34 = vpop.permute.xlu1 %690 }
 0x19a   : > { %712 = vst.msk [vmem:[%s4279_s17 + $0xc] sm:$0xf] %vm708_vm8, %v691_v34  ;;  %v687_v14 = vpop.permute.xlu0 %686 }
 0x19b   : > { %710 = vst.msk [vmem:[%s4279_s17 + $0x4] sm:$0xf] %vm708_vm8, %v687_v14  ;;  %3244 = vmatmul.mubr.msk.bf16.vlgmr.msra.gmra.mrb[0].mxu0 %vm717_vm4, %v2266_v15 }
 0x19c   : > { %3252 = vmatpush3.bf16.msra.mxu0 %v2389_v37  ;;  %3247 = vmatprep.mubr.msk.bf16.mxu0 %vm717_vm4, %v2268_v23 }
 0x19d   : > { %3351 = vmatprep.subr.msk.bf16.mxu0 %vm1571_vm2, %v2491_v22  ;;  %vm2728_vm2 = vcmask 60416  }
 0x19f   : > { %v693_v53 = vpop.permute.xlu0 %692 }
 0x1a0   : > { %713 = vst.msk [vmem:[%s4279_s17 + $0x10] sm:$0xf] %vm708_vm8, %v693_v53 }
 0x1a1   : > { %v695_v57 = vpop.permute.xlu1 %694 }
 0x1a2   : > { %714 = vst.msk [vmem:[%s4279_s17 + $0x14] sm:$0xf] %vm708_vm8, %v695_v57 }
 0x1a3   : > { %v697_v10 = vpop.permute.xlu0 %696  ;;  %3248 = vmatmul.mubr.msk.bf16.gmra.mrb[4].mxu0 %vm717_vm4, %v2270_v56 }
 0x1a4   : > { %715 = vst.msk [vmem:[%s4279_s17 + $0x18] sm:$0xf] %vm708_vm8, %v697_v10  ;;  %3253 = vmatprep.mubr.msk.bf16.mxu0 %vm717_vm4, %v2369_v60 }
 0x1a5   : > { %v699_v8 = vpop.permute.xlu1 %698 }
 0x1a6   : > { %716 = vst.msk [vmem:[%s4279_s17 + $0x1c] sm:$0xf] %vm708_vm8, %v699_v8 }
 0x1ab   : > { %3254 = vmatmul.mubr.msk.bf16.vlgmr.msra.gmra.mrb[0].mxu0 %vm717_vm4, %v2371_v54 }
 0x1ac   : > { %3262 = vmatpush3.bf16.msra.mxu0 %v2550_v32  ;;  %3257 = vmatprep.mubr.msk.bf16.mxu0 %vm717_vm4, %v2373_v55 }
 0x1b3   : > { %3258 = vmatmul.mubr.msk.bf16.gmra.mrb[4].mxu0 %vm717_vm4, %v2375_v45 }
 0x1b4   : > { %3263 = vmatprep.mubr.msk.bf16.mxu0 %vm717_vm4, %v4246_v46  ;;  %v3007_v46 = vld [vmem:[%s4371_s7] ss:$0 sm:$0xff] }
 0x1bb   : > { %3264 = vmatmul.mubr.msk.bf16.vlgmr.msra.gmra.mrb[0].mxu0 %vm717_vm4, %v4249_v49 }
 0x1bc   : > { %3267 = vmatprep.mubr.msk.bf16.mxu0 %vm717_vm4, %v4258_v17 }
 0x1c3   : > { %3268 = vmatmul.mubr.msk.bf16.gmra.mrb[4].mxu0 %vm717_vm4, %v4261_v61 }
 0x21e   : > { %v3185_v36 = vpop.f32.mrb[48].mxu1 }
 0x21f   : > { %v1609_v31 = vpop.f32.mrb[49].mxu1 }
 0x220   : > { %v3186_v42 = vpop.f32.mrb[50].mxu1 }
 0x221   : > { %v1612_v40 = vpop.f32.mrb[51].mxu1 }
 0x232   : > { %v3199_v0 = vpop.f32.mrb[52].mxu1 }
 0x233   : > { %v1705_v51 = vpop.f32.mrb[53].mxu1 }
 0x234   : > { %v3200_v18 = vpop.f32.mrb[54].mxu1 }
 0x235   : > { %v1708_v62 = vpop.f32.mrb[55].mxu1 }
 0x28e   : > { %v3265_v3 = vpop.f32.mrb[0].mxu0 }
 0x28f   : > { %v3273_v49 = vadd.f32 %v3265_v3, %v3185_v36  ;;  %v2586_v2 = vpop.f32.mrb[1].mxu0 }
 0x290   : > { %v3274_v26 = vadd.f32 %v2586_v2, %v1609_v31  ;;  %v3266_v17 = vpop.f32.mrb[2].mxu0 }
 0x291   : > { %v2634_v58 = vadd.f32 %v3273_v49, %v3007_v46  ;;  %v3275_v27 = vadd.f32 %v3266_v17, %v3186_v42  ;;  %v2589_v61 = vpop.f32.mrb[3].mxu0 }
 0x292   : > { %v2632_v4 = vadd.f32 %v3274_v26, %v3007_v46  ;;  %v3276_v21 = vadd.f32 %v2589_v61, %v1612_v40 }
 0x293   : > { %v3010_v29 = vmul.f32 -1.442695, %v2634_v58  ;;  %v2635_v28 = vadd.f32 %v3275_v27, %v3007_v46 }
 0x294   : > { %v3008_v50 = vmul.f32 -1.442695, %v2632_v4  ;;  %v2633_v16 = vadd.f32 %v3276_v21, %v3007_v46 }
 0x295   : > { %3508 = vpow2.f32 %v3010_v29  ;;  %v3011_v19 = vmul.f32 -1.442695, %v2635_v28 }
 0x296   : > { %3510 = vpow2.f32 %v3008_v50  ;;  %v3009_v30 = vmul.f32 -1.442695, %v2633_v16  ;;  %v3269_v5 = vpop.f32.mrb[4].mxu0 }
 0x297   : > { %3512 = vpow2.f32 %v3011_v19  ;;  %v3277_v43 = vadd.f32 %v3269_v5, %v3199_v0  ;;  %v2602_v13 = vpop.f32.mrb[5].mxu0 }
 0x298   : > { %3514 = vpow2.f32 %v3009_v30  ;;  %v3278_v35 = vadd.f32 %v2602_v13, %v1705_v51  ;;  %v3270_v41 = vpop.f32.mrb[6].mxu0 }
 0x299   : > { %v2638_v47 = vadd.f32 %v3277_v43, %v3007_v46  ;;  %v3279_v11 = vadd.f32 %v3270_v41, %v3200_v18  ;;  %v2605_v25 = vpop.f32.mrb[7].mxu0 }
 0x29a   : > { %v2636_v38 = vadd.f32 %v3278_v35, %v3007_v46  ;;  %v3280_v33 = vadd.f32 %v2605_v25, %v1708_v62 }
 0x29b   : > { %v3014_v24 = vmul.f32 -1.442695, %v2638_v47  ;;  %v2639_v34 = vadd.f32 %v3279_v11, %v3007_v46 }
 0x29c   : > { %v3012_v37 = vmul.f32 -1.442695, %v2636_v38  ;;  %v2637_v14 = vadd.f32 %v3280_v33, %v3007_v46 }
 0x29d   : > { %3516 = vpow2.f32 %v3014_v24  ;;  %v3015_v15 = vmul.f32 -1.442695, %v2639_v34 }
 0x29e   : > { %3518 = vpow2.f32 %v3012_v37  ;;  %v3013_v22 = vmul.f32 -1.442695, %v2637_v14 }
 0x29f   : > { %v3509_v39 = vpop.eup %3508  ;;  %3520 = vpow2.f32 %v3015_v15 }
 0x2a0   : > { %v3511_v23 = vpop.eup %3510  ;;  %v2666_v6 = vadd.f32 1.0, %v3509_v39  ;;  %3522 = vpow2.f32 %v3013_v22 }
 0x2a1   : > { %v3513_v44 = vpop.eup %3512  ;;  %v2664_v1 = vadd.f32 1.0, %v3511_v23 }
 0x2a2   : > { %v3515_v52 = vpop.eup %3514  ;;  %3524 = vrcp.f32 %v2666_v6  ;;  %v2667_v48 = vadd.f32 1.0, %v3513_v44 }
 0x2a3   : > { %3526 = vrcp.f32 %v2664_v1  ;;  %v2665_v53 = vadd.f32 1.0, %v3515_v52 }
 0x2a4   : > { %3528 = vrcp.f32 %v2667_v48 }
 0x2a5   : > { %3530 = vrcp.f32 %v2665_v53 }
 0x2a7   : > { %v3517_v63 = vpop.eup %3516 }
 0x2a8   : > { %v3519_v12 = vpop.eup %3518  ;;  %v2670_v9 = vadd.f32 1.0, %v3517_v63 }
 0x2a9   : > { %v3521_v57 = vpop.eup %3520  ;;  %v2668_v10 = vadd.f32 1.0, %v3519_v12 }
 0x2aa   : > { %v3523_v56 = vpop.eup %3522  ;;  %3532 = vrcp.f32 %v2670_v9  ;;  %v2671_v60 = vadd.f32 1.0, %v3521_v57 }
 0x2ab   : > { %3534 = vrcp.f32 %v2668_v10  ;;  %v2669_v8 = vadd.f32 1.0, %v3523_v56 }
 0x2ac   : > { %v3525_v7 = vpop.eup %3524  ;;  %3536 = vrcp.f32 %v2671_v60 }
 0x2ad   : > { %v3527_v20 = vpop.eup %3526  ;;  %v2690_v32 = vmul.f32 %v3525_v7, %v2634_v58  ;;  %3538 = vrcp.f32 %v2669_v8 }
 0x2ae   : > { %v3529_v54 = vpop.eup %3528  ;;  %v2688_v55 = vmul.f32 %v3527_v20, %v2632_v4 }
 0x2af   : > { %v3531_v59 = vpop.eup %3530  ;;  %v3039_v45 = vpack.c.bf16 %v2690_v32, %v2690_v32  ;;  %v2691_v36 = vmul.f32 %v3529_v54, %v2635_v28 }
 0x2b0   : > { %v3037_v31 = vpack.c.bf16 %v2688_v55, %v2688_v55  ;;  %v2689_v42 = vmul.f32 %v3531_v59, %v2633_v16 }
 0x2b1   : > { %2731 = vst.msk [vmem:[%s4279_s17 + $0x8] sm:$0xf] %vm2728_vm2, %v3039_v45  ;;  %v3040_v40 = vpack.c.bf16 %v2691_v36, %v2691_v36 }
 0x2b2   : > { %2729 = vst.msk [vmem:[%s4279_s17] sm:$0xf] %vm2728_vm2, %v3037_v31  ;;  %v3038_v0 = vpack.c.bf16 %v2689_v42, %v2689_v42 }
 0x2b3   : > { %2732 = vst.msk [vmem:[%s4279_s17 + $0xc] sm:$0xf] %vm2728_vm2, %v3040_v40 }
 0x2b4   : > { %v3533_v51 = vpop.eup %3532  ;;  %2730 = vst.msk [vmem:[%s4279_s17 + $0x4] sm:$0xf] %vm2728_vm2, %v3038_v0 }
 0x2b5   : > { %v3535_v18 = vpop.eup %3534  ;;  %v2694_v62 = vmul.f32 %v3533_v51, %v2638_v47 }
 0x2b6   : > { %v3537_v3 = vpop.eup %3536  ;;  %v2692_v46 = vmul.f32 %v3535_v18, %v2636_v38 }
 0x2b7   : > { %v3539_v49 = vpop.eup %3538  ;;  %v3043_v2 = vpack.c.bf16 %v2694_v62, %v2694_v62  ;;  %v2695_v26 = vmul.f32 %v3537_v3, %v2639_v34 }
 0x2b8   : > { %v3041_v17 = vpack.c.bf16 %v2692_v46, %v2692_v46  ;;  %v2693_v58 = vmul.f32 %v3539_v49, %v2637_v14 }
 0x2b9   : > { %2735 = vst.msk [vmem:[%s4279_s17 + $0x18] sm:$0xf] %vm2728_vm2, %v3043_v2  ;;  %v3044_v27 = vpack.c.bf16 %v2695_v26, %v2695_v26 }
 0x2ba   : > { %2733 = vst.msk [vmem:[%s4279_s17 + $0x10] sm:$0xf] %vm2728_vm2, %v3041_v17  ;;  %v3042_v61 = vpack.c.bf16 %v2693_v58, %v2693_v58 }
 0x2bb   : > { %2736 = vst.msk [vmem:[%s4279_s17 + $0x1c] sm:$0xf] %vm2728_vm2, %v3044_v27 }
 0x2bc   : > { %2734 = vst.msk [vmem:[%s4279_s17 + $0x14] sm:$0xf] %vm2728_vm2, %v3042_v61 }
 0x2bd PF: > { %s18_s9 = sadd.s32 1, %s3578_s9   ;;  %s4379_s27 = smov %s3566_s28 }
 0x2be   : > { %p15_p10 = scmp.ge.s32.totalorder %s18_s9, 4   ;;  %s4380_s28 = smov %s3664_s13 }
 0x2bf   : > { %s4381_s29 = smov %s3574_s30  ;;  %s4382_s30 = smov %s4384_s10 }
 0x2c0   :  { %17 = sbr.rel (!%p15_p10) target bundleno = 3 (0x3), region = 137 }

</bundles_post_ra>
